<compile_context>
chip_gen: v5e
topology: v5e:2x2
jax: 0.10.0
libtpu: 0.0.40
codegen_flags: <defaults>
</compile_context>

<pallas_src>
import math
import functools
import operator

import jax
import jax.numpy as jnp
import numpy as np
from jax import lax
from jax.experimental import pallas as pl
from jax.experimental.pallas import tpu as pltpu


# ----------------------------------------------------------------------------
# In-kernel helpers
# ----------------------------------------------------------------------------
def _layernorm(x, gamma, beta, eps):
    # One-pass statistics: var = E[x^2] - E[x]^2 (halves the XLU reductions).
    inv_n = 1.0 / x.shape[1]
    mu = jnp.sum(x, axis=1, keepdims=True) * inv_n
    ms = jnp.sum(x * x, axis=1, keepdims=True) * inv_n
    var = ms - mu * mu
    return (x - mu) * lax.rsqrt(var + eps) * gamma + beta


# ----------------------------------------------------------------------------
# Fused MAB kernel
# ----------------------------------------------------------------------------
def _mab_kernel(q_ref, k_ref, wq_ref, bq_ref, wk_ref, bk_ref, wv_ref, bv_ref,
                wo_ref, bo_ref, g0_ref, be0_ref, g1_ref, be1_ref, y_ref,
                *, num_heads, scale, use_ln, eps, mm_dtype):
    f32 = jnp.float32
    H = num_heads
    dim_V = wq_ref.shape[1]
    ds = dim_V // H

    q = q_ref[...].astype(mm_dtype)
    k = k_ref[...].astype(mm_dtype)

    # --- projections: single wide matmuls (MXU), f32 accumulation -----------
    Qp = jnp.dot(q, wq_ref[...].astype(mm_dtype),
                 preferred_element_type=f32) + bq_ref[...]
    Kp = jnp.dot(k, wk_ref[...].astype(mm_dtype),
                 preferred_element_type=f32) + bk_ref[...]
    Vp = jnp.dot(k, wv_ref[...].astype(mm_dtype),
                 preferred_element_type=f32) + bv_ref[...]

    # Per-head static lane slices (stay in vregs/VMEM — no HBM traffic and no
    # materialized head-relayout like the torch split/cat does).
    q_h = [Qp[:, h * ds:(h + 1) * ds] for h in range(H)]
    k_h = [Kp[:, h * ds:(h + 1) * ds].astype(mm_dtype) for h in range(H)]
    v_h = [Vp[:, h * ds:(h + 1) * ds].astype(mm_dtype) for h in range(H)]

    # Contract the ds axes directly (q @ k^T without any transpose pass).
    dn = (((1,), (1,)), ((), ()))

    o_heads = []
    for h in range(H):
        qs = (q_h[h] * scale).astype(mm_dtype)      # fold 1/sqrt(dim_V) into Q
        # Scores of this head's queries against the keys of *all* heads:
        # the 2-D torch forward softmaxes over the full H*Nk key axis
        # (cross-head softmax), reproduced exactly, block by block.
        s = [lax.dot_general(qs, k_h[g], dn, preferred_element_type=f32)
             for g in range(H)]
        m = functools.reduce(
            jnp.maximum, [jnp.max(sb, axis=1, keepdims=True) for sb in s])
        e = [jnp.exp(sb - m) for sb in s]
        denom = functools.reduce(
            operator.add, [jnp.sum(eb, axis=1, keepdims=True) for eb in e])
        av = functools.reduce(
            operator.add,
            [jnp.dot(e[g].astype(mm_dtype), v_h[g], preferred_element_type=f32)
             for g in range(H)])
        # residual: Q_ + A @ V_  (normalize with approximate reciprocal on EUP)
        o_heads.append(q_h[h] + av * pl.reciprocal(denom, approx=True))

    O = jnp.concatenate(o_heads, axis=1)            # [tile_q, dim_V]

    if use_ln:
        O = _layernorm(O, g0_ref[...], be0_ref[...], eps)
    h_act = jnp.dot(O.astype(mm_dtype), wo_ref[...].astype(mm_dtype),
                    preferred_element_type=f32) + bo_ref[...]
    O = O + jnp.maximum(h_act, 0.0)                 # O + relu(fc_o(O))
    if use_ln:
        O = _layernorm(O, g1_ref[...], be1_ref[...], eps)

    y_ref[...] = O.astype(y_ref.dtype)


# ----------------------------------------------------------------------------
# pallas_call wrapper
# ----------------------------------------------------------------------------
def _full_spec(shape):
    return pl.BlockSpec(shape, lambda i: (0,) * len(shape))


def _round_up(x, m):
    return (x + m - 1) // m * m


def mab_forward(Q, K, params, num_heads, ln=False, *,
                mm_dtype=jnp.float32, tile_q=None):
    Nq, dim_Q = Q.shape
    Nk, dim_K = K.shape
    dim_V = params["wq"].shape[1]
    assert dim_V % num_heads == 0

    # Row-tile the query axis; every output row is independent, so the grid
    # axis is "parallel" (shards across the 2 TensorCores on v7x).  Ragged Nq
    # is handled by zero-padding the query rows and slicing the result — the
    # padded rows compute harmless garbage that is discarded.
    if tile_q is None:
        tile_q = 256 if Nq > 256 else _round_up(Nq, 8)
    tile_q = max(8, _round_up(tile_q, 8))           # keep (8,128) tiling happy
    Nq_pad = _round_up(Nq, tile_q)
    Q_in = Q if Nq_pad == Nq else jnp.pad(Q, ((0, Nq_pad - Nq), (0, 0)))
    grid = (Nq_pad // tile_q,)

    scale = 1.0 / math.sqrt(dim_V)
    kernel = functools.partial(_mab_kernel, num_heads=num_heads, scale=scale,
                               use_ln=ln, eps=1e-5, mm_dtype=mm_dtype)

    H = num_heads
    ds = dim_V // H
    flops = 2 * (Nq * dim_Q * dim_V                 # fc_q
                 + 2 * Nk * dim_K * dim_V           # fc_k, fc_v
                 + 2 * (H * Nq) * (H * Nk) * ds     # scores + A@V (cross-head)
                 + Nq * dim_V * dim_V)              # fc_o
    bytes_accessed = 4 * (Q.size + K.size + Nq * dim_V
                          + sum(int(np.prod(v.shape)) for v in params.values()))
    cost = pl.CostEstimate(flops=int(flops),
                           transcendentals=int(H * Nq * H * Nk),
                           bytes_accessed=int(bytes_accessed))

    in_specs = [
        pl.BlockSpec((tile_q, dim_Q), lambda i: (i, 0)),   # Q tiled over rows
        _full_spec((Nk, dim_K)),                           # K full per step
        _full_spec(params["wq"].shape), _full_spec(params["bq"].shape),
        _full_spec(params["wk"].shape), _full_spec(params["bk"].shape),
        _full_spec(params["wv"].shape), _full_spec(params["bv"].shape),
        _full_spec(params["wo"].shape), _full_spec(params["bo"].shape),
        _full_spec(params["g0"].shape), _full_spec(params["be0"].shape),
        _full_spec(params["g1"].shape), _full_spec(params["be1"].shape),
    ]

    out = pl.pallas_call(
        kernel,
        out_shape=jax.ShapeDtypeStruct((Nq_pad, dim_V), Q.dtype),
        grid=grid,
        in_specs=in_specs,
        out_specs=pl.BlockSpec((tile_q, dim_V), lambda i: (i, 0)),
        compiler_params=pltpu.CompilerParams(
            dimension_semantics=("parallel",)),
        cost_estimate=cost,
    )(Q_in, K, params["wq"], params["bq"], params["wk"], params["bk"],
      params["wv"], params["bv"], params["wo"], params["bo"],
      params["g0"], params["be0"], params["g1"], params["be1"])

    return out if Nq_pad == Nq else out[:Nq]


# ----------------------------------------------------------------------------
# Pure-JAX reference (mirrors the PyTorch forward exactly, f32 throughout)
# ----------------------------------------------------------------------------
def mab_reference(Q, K, params, num_heads, ln=False):
    dim_V = params["wq"].shape[1]
    Qp = Q @ params["wq"] + params["bq"]
    Kp = K @ params["wk"] + params["bk"]
    Vp = K @ params["wv"] + params["bv"]
    Q_ = jnp.concatenate(jnp.split(Qp, num_heads, axis=1), axis=0)
    K_ = jnp.concatenate(jnp.split(Kp, num_heads, axis=1), axis=0)
    V_ = jnp.concatenate(jnp.split(Vp, num_heads, axis=1), axis=0)
    A = jax.nn.softmax(Q_ @ K_.T / math.sqrt(dim_V), axis=1)
    O_ = Q_ + A @ V_
    O = jnp.concatenate(jnp.split(O_, num_heads, axis=0), axis=1)

    def lnorm(x, g, b):
        mu = jnp.mean(x, axis=1, keepdims=True)
        var = jnp.mean((x - mu) ** 2, axis=1, keepdims=True)
        return (x - mu) / jnp.sqrt(var + 1e-5) * g + b

    if ln:
        O = lnorm(O, params["g0"], params["be0"])
    O = O + jax.nn.relu(O @ params["wo"] + params["bo"])
    if ln:
        O = lnorm(O, params["g1"], params["be1"])
    return O


# ----------------------------------------------------------------------------
# Deterministic parameter init (PyTorch nn.Linear-style uniform bounds)
# ----------------------------------------------------------------------------
def init_params(key, dim_Q, dim_K, dim_V):
    ks = jax.random.split(key, 8)

    def lin_init(kw, kb, fan_in, fan_out):
        bound = 1.0 / math.sqrt(fan_in)
        w = jax.random.uniform(kw, (fan_in, fan_out), jnp.float32, -bound, bound)
        b = jax.random.uniform(kb, (1, fan_out), jnp.float32, -bound, bound)
        return w, b

    wq, bq = lin_init(ks[0], ks[1], dim_Q, dim_V)
    wk, bk = lin_init(ks[2], ks[3], dim_K, dim_V)
    wv, bv = lin_init(ks[4], ks[5], dim_K, dim_V)
    wo, bo = lin_init(ks[6], ks[7], dim_V, dim_V)
    return dict(
        wq=wq, bq=bq, wk=wk, bk=bk, wv=wv, bv=bv, wo=wo, bo=bo,
        g0=jnp.ones((1, dim_V), jnp.float32), be0=jnp.zeros((1, dim_V), jnp.float32),
        g1=jnp.ones((1, dim_V), jnp.float32), be1=jnp.zeros((1, dim_V), jnp.float32),
    )


if __name__ == "__main__":
    dim_Q, dim_K, dim_V, num_heads = 32, 24, 32, 4
    Nq, Nk = 8, 16

    root = jax.random.PRNGKey(0)
    kp, kq, kk = jax.random.split(root, 3)
    params = init_params(kp, dim_Q, dim_K, dim_V)
    Q = jax.random.normal(kq, (Nq, dim_Q), jnp.float32)
    K = jax.random.normal(kk, (Nk, dim_K), jnp.float32)

    # f32 MXU operands; tolerance accounts for the approximate EUP reciprocal.
    for use_ln in (False, True):
        out = jax.block_until_ready(mab_forward(Q, K, params, num_heads, ln=use_ln))
        ref = mab_reference(Q, K, params, num_heads, ln=use_ln)
        np.testing.assert_allclose(np.asarray(out), np.asarray(ref),
                                   rtol=2e-3, atol=2e-3)

    # Ragged query count (Nq not a multiple of 8) — exercises the padding path.
    Q_rag = jax.random.normal(jax.random.PRNGKey(1), (10, dim_Q), jnp.float32)
    out = jax.block_until_ready(mab_forward(Q_rag, K, params, num_heads, ln=True))
    ref = mab_reference(Q_rag, K, params, num_heads, ln=True)
    np.testing.assert_allclose(np.asarray(out), np.asarray(ref),
                               rtol=2e-3, atol=2e-3)

    # Multi-tile grid (grid=3, "parallel" query tiles) — exercises tiling.
    Q_big = jax.random.normal(jax.random.PRNGKey(2), (24, dim_Q), jnp.float32)
    out = jax.block_until_ready(
        mab_forward(Q_big, K, params, num_heads, ln=True, tile_q=8))
    ref = mab_reference(Q_big, K, params, num_heads, ln=True)
    np.testing.assert_allclose(np.asarray(out), np.asarray(ref),
                               rtol=2e-3, atol=2e-3)

    # bf16 MXU-operand / f32-accumulate throughput mode (v6e/v7x); elementwise
    # softmax + LayerNorm math stays f32. Checked against the f32 reference
    # with a bf16-appropriate tolerance.
    out_bf16 = jax.block_until_ready(
        mab_forward(Q, K, params, num_heads, ln=True, mm_dtype=jnp.bfloat16))
    ref = mab_reference(Q, K, params, num_heads, ln=True)
    np.testing.assert_allclose(np.asarray(out_bf16), np.asarray(ref),
                               rtol=5e-2, atol=5e-2)

    print("KERNEL_OK")
</pallas_src>

<mosaic_0001>
module attributes {stable_mosaic.version = 11 : i64} {
  func.func @_mab_kernel(%arg0: i32, %arg1: memref<8x32xf32, #tpu.memory_space<vmem>>, %arg2: memref<16x24xf32, #tpu.memory_space<vmem>>, %arg3: memref<32x32xf32, #tpu.memory_space<vmem>>, %arg4: memref<1x32xf32, #tpu.memory_space<vmem>>, %arg5: memref<24x32xf32, #tpu.memory_space<vmem>>, %arg6: memref<1x32xf32, #tpu.memory_space<vmem>>, %arg7: memref<24x32xf32, #tpu.memory_space<vmem>>, %arg8: memref<1x32xf32, #tpu.memory_space<vmem>>, %arg9: memref<32x32xf32, #tpu.memory_space<vmem>>, %arg10: memref<1x32xf32, #tpu.memory_space<vmem>>, %arg11: memref<1x32xf32, #tpu.memory_space<vmem>>, %arg12: memref<1x32xf32, #tpu.memory_space<vmem>>, %arg13: memref<1x32xf32, #tpu.memory_space<vmem>>, %arg14: memref<1x32xf32, #tpu.memory_space<vmem>>, %arg15: memref<8x32xf32, #tpu.memory_space<vmem>>) attributes {dimension_semantics = [#tpu.dimension_semantics<parallel>], iteration_bounds = array<i64: 1>, scalar_prefetch = 0 : i64, scratch_operands = 0 : i64, tpu.core_type = #tpu.core_type<tc>, window_params = [{transform_indices = @transform_0, window_bounds = array<i64: 8, 32>}, {pipeline_mode = #tpu.pipeline_mode<synchronous>, transform_indices = @transform_1, window_bounds = array<i64: 16, 24>}, {pipeline_mode = #tpu.pipeline_mode<synchronous>, transform_indices = @transform_2, window_bounds = array<i64: 32, 32>}, {pipeline_mode = #tpu.pipeline_mode<synchronous>, transform_indices = @transform_3, window_bounds = array<i64: 1, 32>}, {pipeline_mode = #tpu.pipeline_mode<synchronous>, transform_indices = @transform_4, window_bounds = array<i64: 24, 32>}, {pipeline_mode = #tpu.pipeline_mode<synchronous>, transform_indices = @transform_5, window_bounds = array<i64: 1, 32>}, {pipeline_mode = #tpu.pipeline_mode<synchronous>, transform_indices = @transform_6, window_bounds = array<i64: 24, 32>}, {pipeline_mode = #tpu.pipeline_mode<synchronous>, transform_indices = @transform_7, window_bounds = array<i64: 1, 32>}, {pipeline_mode = #tpu.pipeline_mode<synchronous>, transform_indices = @transform_8, window_bounds = array<i64: 32, 32>}, {pipeline_mode = #tpu.pipeline_mode<synchronous>, transform_indices = @transform_9, window_bounds = array<i64: 1, 32>}, {pipeline_mode = #tpu.pipeline_mode<synchronous>, transform_indices = @transform_10, window_bounds = array<i64: 1, 32>}, {pipeline_mode = #tpu.pipeline_mode<synchronous>, transform_indices = @transform_11, window_bounds = array<i64: 1, 32>}, {pipeline_mode = #tpu.pipeline_mode<synchronous>, transform_indices = @transform_12, window_bounds = array<i64: 1, 32>}, {pipeline_mode = #tpu.pipeline_mode<synchronous>, transform_indices = @transform_13, window_bounds = array<i64: 1, 32>}, {transform_indices = @transform_14, window_bounds = array<i64: 8, 32>}]} {
    %c0 = arith.constant 0 : index
    %c0_0 = arith.constant 0 : index
    %0 = vector.load %arg1[%c0, %c0_0] : memref<8x32xf32, #tpu.memory_space<vmem>>, vector<8x32xf32>
    %c0_1 = arith.constant 0 : index
    %c0_2 = arith.constant 0 : index
    %1 = vector.load %arg2[%c0_1, %c0_2] : memref<16x24xf32, #tpu.memory_space<vmem>>, vector<16x24xf32>
    %c0_3 = arith.constant 0 : index
    %c0_4 = arith.constant 0 : index
    %2 = vector.load %arg3[%c0_3, %c0_4] : memref<32x32xf32, #tpu.memory_space<vmem>>, vector<32x32xf32>
    %cst = arith.constant dense<0.000000e+00> : vector<8x32xf32>
    %3 = tpu.matmul %0, %2, %cst {dimension_numbers = #tpu.dot_dimension_numbers<[1], [0], [0], [1], [0, 0, 1, 1], [], []>} : vector<8x32xf32>, vector<32x32xf32>, vector<8x32xf32> -> vector<8x32xf32>
    %c0_5 = arith.constant 0 : index
    %c0_6 = arith.constant 0 : index
    %4 = vector.load %arg4[%c0_5, %c0_6] : memref<1x32xf32, #tpu.memory_space<vmem>>, vector<1x32xf32>
    %5 = vector.broadcast %4 : vector<1x32xf32> to vector<8x32xf32>
    %6 = arith.addf %3, %5 : vector<8x32xf32>
    %c0_7 = arith.constant 0 : index
    %c0_8 = arith.constant 0 : index
    %7 = vector.load %arg5[%c0_7, %c0_8] : memref<24x32xf32, #tpu.memory_space<vmem>>, vector<24x32xf32>
    %cst_9 = arith.constant dense<0.000000e+00> : vector<16x32xf32>
    %8 = tpu.matmul %1, %7, %cst_9 {dimension_numbers = #tpu.dot_dimension_numbers<[1], [0], [0], [1], [0, 0, 1, 1], [], []>} : vector<16x24xf32>, vector<24x32xf32>, vector<16x32xf32> -> vector<16x32xf32>
    %c0_10 = arith.constant 0 : index
    %c0_11 = arith.constant 0 : index
    %9 = vector.load %arg6[%c0_10, %c0_11] : memref<1x32xf32, #tpu.memory_space<vmem>>, vector<1x32xf32>
    %10 = vector.broadcast %9 : vector<1x32xf32> to vector<16x32xf32>
    %11 = arith.addf %8, %10 : vector<16x32xf32>
    %c0_12 = arith.constant 0 : index
    %c0_13 = arith.constant 0 : index
    %12 = vector.load %arg7[%c0_12, %c0_13] : memref<24x32xf32, #tpu.memory_space<vmem>>, vector<24x32xf32>
    %cst_14 = arith.constant dense<0.000000e+00> : vector<16x32xf32>
    %13 = tpu.matmul %1, %12, %cst_14 {dimension_numbers = #tpu.dot_dimension_numbers<[1], [0], [0], [1], [0, 0, 1, 1], [], []>} : vector<16x24xf32>, vector<24x32xf32>, vector<16x32xf32> -> vector<16x32xf32>
    %c0_15 = arith.constant 0 : index
    %c0_16 = arith.constant 0 : index
    %14 = vector.load %arg8[%c0_15, %c0_16] : memref<1x32xf32, #tpu.memory_space<vmem>>, vector<1x32xf32>
    %15 = vector.broadcast %14 : vector<1x32xf32> to vector<16x32xf32>
    %16 = arith.addf %13, %15 : vector<16x32xf32>
    %17 = vector.extract_strided_slice %6 {offsets = [0, 0], sizes = [8, 8], strides = [1, 1]} : vector<8x32xf32> to vector<8x8xf32>
    %18 = vector.extract_strided_slice %6 {offsets = [0, 8], sizes = [8, 8], strides = [1, 1]} : vector<8x32xf32> to vector<8x8xf32>
    %19 = vector.extract_strided_slice %6 {offsets = [0, 16], sizes = [8, 8], strides = [1, 1]} : vector<8x32xf32> to vector<8x8xf32>
    %20 = vector.extract_strided_slice %6 {offsets = [0, 24], sizes = [8, 8], strides = [1, 1]} : vector<8x32xf32> to vector<8x8xf32>
    %21 = vector.extract_strided_slice %11 {offsets = [0, 0], sizes = [16, 8], strides = [1, 1]} : vector<16x32xf32> to vector<16x8xf32>
    %22 = vector.extract_strided_slice %11 {offsets = [0, 8], sizes = [16, 8], strides = [1, 1]} : vector<16x32xf32> to vector<16x8xf32>
    %23 = vector.extract_strided_slice %11 {offsets = [0, 16], sizes = [16, 8], strides = [1, 1]} : vector<16x32xf32> to vector<16x8xf32>
    %24 = vector.extract_strided_slice %11 {offsets = [0, 24], sizes = [16, 8], strides = [1, 1]} : vector<16x32xf32> to vector<16x8xf32>
    %25 = vector.extract_strided_slice %16 {offsets = [0, 0], sizes = [16, 8], strides = [1, 1]} : vector<16x32xf32> to vector<16x8xf32>
    %26 = vector.extract_strided_slice %16 {offsets = [0, 8], sizes = [16, 8], strides = [1, 1]} : vector<16x32xf32> to vector<16x8xf32>
    %27 = vector.extract_strided_slice %16 {offsets = [0, 16], sizes = [16, 8], strides = [1, 1]} : vector<16x32xf32> to vector<16x8xf32>
    %28 = vector.extract_strided_slice %16 {offsets = [0, 24], sizes = [16, 8], strides = [1, 1]} : vector<16x32xf32> to vector<16x8xf32>
    %cst_17 = arith.constant 0.176776692 : f32
    %29 = vector.broadcast %cst_17 : f32 to vector<8x8xf32>
    %30 = arith.mulf %17, %29 : vector<8x8xf32>
    %cst_18 = arith.constant dense<0.000000e+00> : vector<8x16xf32>
    %31 = tpu.matmul %30, %21, %cst_18 {dimension_numbers = #tpu.dot_dimension_numbers<[1], [1], [0], [0], [0, 0, 1, 0], [], []>} : vector<8x8xf32>, vector<16x8xf32>, vector<8x16xf32> -> vector<8x16xf32>
    %cst_19 = arith.constant dense<0.000000e+00> : vector<8x16xf32>
    %32 = tpu.matmul %30, %22, %cst_19 {dimension_numbers = #tpu.dot_dimension_numbers<[1], [1], [0], [0], [0, 0, 1, 0], [], []>} : vector<8x8xf32>, vector<16x8xf32>, vector<8x16xf32> -> vector<8x16xf32>
    %cst_20 = arith.constant dense<0.000000e+00> : vector<8x16xf32>
    %33 = tpu.matmul %30, %23, %cst_20 {dimension_numbers = #tpu.dot_dimension_numbers<[1], [1], [0], [0], [0, 0, 1, 0], [], []>} : vector<8x8xf32>, vector<16x8xf32>, vector<8x16xf32> -> vector<8x16xf32>
    %cst_21 = arith.constant dense<0.000000e+00> : vector<8x16xf32>
    %34 = tpu.matmul %30, %24, %cst_21 {dimension_numbers = #tpu.dot_dimension_numbers<[1], [1], [0], [0], [0, 0, 1, 0], [], []>} : vector<8x8xf32>, vector<16x8xf32>, vector<8x16xf32> -> vector<8x16xf32>
    %cst_22 = arith.constant dense<0xFF800000> : vector<8xf32>
    %35 = vector.multi_reduction <maximumf>, %31, %cst_22 [1] : vector<8x16xf32> to vector<8xf32>
    %36 = vector.shape_cast %35 : vector<8xf32> to vector<8x1xf32>
    %cst_23 = arith.constant dense<0xFF800000> : vector<8xf32>
    %37 = vector.multi_reduction <maximumf>, %32, %cst_23 [1] : vector<8x16xf32> to vector<8xf32>
    %38 = vector.shape_cast %37 : vector<8xf32> to vector<8x1xf32>
    %cst_24 = arith.constant dense<0xFF800000> : vector<8xf32>
    %39 = vector.multi_reduction <maximumf>, %33, %cst_24 [1] : vector<8x16xf32> to vector<8xf32>
    %40 = vector.shape_cast %39 : vector<8xf32> to vector<8x1xf32>
    %cst_25 = arith.constant dense<0xFF800000> : vector<8xf32>
    %41 = vector.multi_reduction <maximumf>, %34, %cst_25 [1] : vector<8x16xf32> to vector<8xf32>
    %42 = vector.shape_cast %41 : vector<8xf32> to vector<8x1xf32>
    %43 = arith.maximumf %36, %38 : vector<8x1xf32>
    %44 = arith.maximumf %43, %40 : vector<8x1xf32>
    %45 = arith.maximumf %44, %42 : vector<8x1xf32>
    %46 = vector.broadcast %45 : vector<8x1xf32> to vector<8x16xf32>
    %47 = arith.subf %31, %46 : vector<8x16xf32>
    %48 = math.exp %47 : vector<8x16xf32>
    %49 = vector.broadcast %45 : vector<8x1xf32> to vector<8x16xf32>
    %50 = arith.subf %32, %49 : vector<8x16xf32>
    %51 = math.exp %50 : vector<8x16xf32>
    %52 = vector.broadcast %45 : vector<8x1xf32> to vector<8x16xf32>
    %53 = arith.subf %33, %52 : vector<8x16xf32>
    %54 = math.exp %53 : vector<8x16xf32>
    %55 = vector.broadcast %45 : vector<8x1xf32> to vector<8x16xf32>
    %56 = arith.subf %34, %55 : vector<8x16xf32>
    %57 = math.exp %56 : vector<8x16xf32>
    %cst_26 = arith.constant dense<0.000000e+00> : vector<8xf32>
    %58 = vector.multi_reduction <add>, %48, %cst_26 [1] : vector<8x16xf32> to vector<8xf32>
    %59 = vector.shape_cast %58 : vector<8xf32> to vector<8x1xf32>
    %cst_27 = arith.constant dense<0.000000e+00> : vector<8xf32>
    %60 = vector.multi_reduction <add>, %51, %cst_27 [1] : vector<8x16xf32> to vector<8xf32>
    %61 = vector.shape_cast %60 : vector<8xf32> to vector<8x1xf32>
    %cst_28 = arith.constant dense<0.000000e+00> : vector<8xf32>
    %62 = vector.multi_reduction <add>, %54, %cst_28 [1] : vector<8x16xf32> to vector<8xf32>
    %63 = vector.shape_cast %62 : vector<8xf32> to vector<8x1xf32>
    %cst_29 = arith.constant dense<0.000000e+00> : vector<8xf32>
    %64 = vector.multi_reduction <add>, %57, %cst_29 [1] : vector<8x16xf32> to vector<8xf32>
    %65 = vector.shape_cast %64 : vector<8xf32> to vector<8x1xf32>
    %66 = arith.addf %59, %61 : vector<8x1xf32>
    %67 = arith.addf %66, %63 : vector<8x1xf32>
    %68 = arith.addf %67, %65 : vector<8x1xf32>
    %cst_30 = arith.constant dense<0.000000e+00> : vector<8x8xf32>
    %69 = tpu.matmul %48, %25, %cst_30 {dimension_numbers = #tpu.dot_dimension_numbers<[1], [0], [0], [1], [0, 0, 1, 1], [], []>} : vector<8x16xf32>, vector<16x8xf32>, vector<8x8xf32> -> vector<8x8xf32>
    %cst_31 = arith.constant dense<0.000000e+00> : vector<8x8xf32>
    %70 = tpu.matmul %51, %26, %cst_31 {dimension_numbers = #tpu.dot_dimension_numbers<[1], [0], [0], [1], [0, 0, 1, 1], [], []>} : vector<8x16xf32>, vector<16x8xf32>, vector<8x8xf32> -> vector<8x8xf32>
    %cst_32 = arith.constant dense<0.000000e+00> : vector<8x8xf32>
    %71 = tpu.matmul %54, %27, %cst_32 {dimension_numbers = #tpu.dot_dimension_numbers<[1], [0], [0], [1], [0, 0, 1, 1], [], []>} : vector<8x16xf32>, vector<16x8xf32>, vector<8x8xf32> -> vector<8x8xf32>
    %cst_33 = arith.constant dense<0.000000e+00> : vector<8x8xf32>
    %72 = tpu.matmul %57, %28, %cst_33 {dimension_numbers = #tpu.dot_dimension_numbers<[1], [0], [0], [1], [0, 0, 1, 1], [], []>} : vector<8x16xf32>, vector<16x8xf32>, vector<8x8xf32> -> vector<8x8xf32>
    %73 = arith.addf %69, %70 : vector<8x8xf32>
    %74 = arith.addf %73, %71 : vector<8x8xf32>
    %75 = arith.addf %74, %72 : vector<8x8xf32>
    %76 = tpu.reciprocal %68 {approx = true} : vector<8x1xf32> -> vector<8x1xf32>
    %77 = vector.broadcast %76 : vector<8x1xf32> to vector<8x8xf32>
    %78 = arith.mulf %75, %77 : vector<8x8xf32>
    %79 = arith.addf %17, %78 : vector<8x8xf32>
    %cst_34 = arith.constant 0.176776692 : f32
    %80 = vector.broadcast %cst_34 : f32 to vector<8x8xf32>
    %81 = arith.mulf %18, %80 : vector<8x8xf32>
    %cst_35 = arith.constant dense<0.000000e+00> : vector<8x16xf32>
    %82 = tpu.matmul %81, %21, %cst_35 {dimension_numbers = #tpu.dot_dimension_numbers<[1], [1], [0], [0], [0, 0, 1, 0], [], []>} : vector<8x8xf32>, vector<16x8xf32>, vector<8x16xf32> -> vector<8x16xf32>
    %cst_36 = arith.constant dense<0.000000e+00> : vector<8x16xf32>
    %83 = tpu.matmul %81, %22, %cst_36 {dimension_numbers = #tpu.dot_dimension_numbers<[1], [1], [0], [0], [0, 0, 1, 0], [], []>} : vector<8x8xf32>, vector<16x8xf32>, vector<8x16xf32> -> vector<8x16xf32>
    %cst_37 = arith.constant dense<0.000000e+00> : vector<8x16xf32>
    %84 = tpu.matmul %81, %23, %cst_37 {dimension_numbers = #tpu.dot_dimension_numbers<[1], [1], [0], [0], [0, 0, 1, 0], [], []>} : vector<8x8xf32>, vector<16x8xf32>, vector<8x16xf32> -> vector<8x16xf32>
    %cst_38 = arith.constant dense<0.000000e+00> : vector<8x16xf32>
    %85 = tpu.matmul %81, %24, %cst_38 {dimension_numbers = #tpu.dot_dimension_numbers<[1], [1], [0], [0], [0, 0, 1, 0], [], []>} : vector<8x8xf32>, vector<16x8xf32>, vector<8x16xf32> -> vector<8x16xf32>
    %cst_39 = arith.constant dense<0xFF800000> : vector<8xf32>
    %86 = vector.multi_reduction <maximumf>, %82, %cst_39 [1] : vector<8x16xf32> to vector<8xf32>
    %87 = vector.shape_cast %86 : vector<8xf32> to vector<8x1xf32>
    %cst_40 = arith.constant dense<0xFF800000> : vector<8xf32>
    %88 = vector.multi_reduction <maximumf>, %83, %cst_40 [1] : vector<8x16xf32> to vector<8xf32>
    %89 = vector.shape_cast %88 : vector<8xf32> to vector<8x1xf32>
    %cst_41 = arith.constant dense<0xFF800000> : vector<8xf32>
    %90 = vector.multi_reduction <maximumf>, %84, %cst_41 [1] : vector<8x16xf32> to vector<8xf32>
    %91 = vector.shape_cast %90 : vector<8xf32> to vector<8x1xf32>
    %cst_42 = arith.constant dense<0xFF800000> : vector<8xf32>
    %92 = vector.multi_reduction <maximumf>, %85, %cst_42 [1] : vector<8x16xf32> to vector<8xf32>
    %93 = vector.shape_cast %92 : vector<8xf32> to vector<8x1xf32>
    %94 = arith.maximumf %87, %89 : vector<8x1xf32>
    %95 = arith.maximumf %94, %91 : vector<8x1xf32>
    %96 = arith.maximumf %95, %93 : vector<8x1xf32>
    %97 = vector.broadcast %96 : vector<8x1xf32> to vector<8x16xf32>
    %98 = arith.subf %82, %97 : vector<8x16xf32>
    %99 = math.exp %98 : vector<8x16xf32>
    %100 = vector.broadcast %96 : vector<8x1xf32> to vector<8x16xf32>
    %101 = arith.subf %83, %100 : vector<8x16xf32>
    %102 = math.exp %101 : vector<8x16xf32>
    %103 = vector.broadcast %96 : vector<8x1xf32> to vector<8x16xf32>
    %104 = arith.subf %84, %103 : vector<8x16xf32>
    %105 = math.exp %104 : vector<8x16xf32>
    %106 = vector.broadcast %96 : vector<8x1xf32> to vector<8x16xf32>
    %107 = arith.subf %85, %106 : vector<8x16xf32>
    %108 = math.exp %107 : vector<8x16xf32>
    %cst_43 = arith.constant dense<0.000000e+00> : vector<8xf32>
    %109 = vector.multi_reduction <add>, %99, %cst_43 [1] : vector<8x16xf32> to vector<8xf32>
    %110 = vector.shape_cast %109 : vector<8xf32> to vector<8x1xf32>
    %cst_44 = arith.constant dense<0.000000e+00> : vector<8xf32>
    %111 = vector.multi_reduction <add>, %102, %cst_44 [1] : vector<8x16xf32> to vector<8xf32>
    %112 = vector.shape_cast %111 : vector<8xf32> to vector<8x1xf32>
    %cst_45 = arith.constant dense<0.000000e+00> : vector<8xf32>
    %113 = vector.multi_reduction <add>, %105, %cst_45 [1] : vector<8x16xf32> to vector<8xf32>
    %114 = vector.shape_cast %113 : vector<8xf32> to vector<8x1xf32>
    %cst_46 = arith.constant dense<0.000000e+00> : vector<8xf32>
    %115 = vector.multi_reduction <add>, %108, %cst_46 [1] : vector<8x16xf32> to vector<8xf32>
    %116 = vector.shape_cast %115 : vector<8xf32> to vector<8x1xf32>
    %117 = arith.addf %110, %112 : vector<8x1xf32>
    %118 = arith.addf %117, %114 : vector<8x1xf32>
    %119 = arith.addf %118, %116 : vector<8x1xf32>
    %cst_47 = arith.constant dense<0.000000e+00> : vector<8x8xf32>
    %120 = tpu.matmul %99, %25, %cst_47 {dimension_numbers = #tpu.dot_dimension_numbers<[1], [0], [0], [1], [0, 0, 1, 1], [], []>} : vector<8x16xf32>, vector<16x8xf32>, vector<8x8xf32> -> vector<8x8xf32>
    %cst_48 = arith.constant dense<0.000000e+00> : vector<8x8xf32>
    %121 = tpu.matmul %102, %26, %cst_48 {dimension_numbers = #tpu.dot_dimension_numbers<[1], [0], [0], [1], [0, 0, 1, 1], [], []>} : vector<8x16xf32>, vector<16x8xf32>, vector<8x8xf32> -> vector<8x8xf32>
    %cst_49 = arith.constant dense<0.000000e+00> : vector<8x8xf32>
    %122 = tpu.matmul %105, %27, %cst_49 {dimension_numbers = #tpu.dot_dimension_numbers<[1], [0], [0], [1], [0, 0, 1, 1], [], []>} : vector<8x16xf32>, vector<16x8xf32>, vector<8x8xf32> -> vector<8x8xf32>
    %cst_50 = arith.constant dense<0.000000e+00> : vector<8x8xf32>
    %123 = tpu.matmul %108, %28, %cst_50 {dimension_numbers = #tpu.dot_dimension_numbers<[1], [0], [0], [1], [0, 0, 1, 1], [], []>} : vector<8x16xf32>, vector<16x8xf32>, vector<8x8xf32> -> vector<8x8xf32>
    %124 = arith.addf %120, %121 : vector<8x8xf32>
    %125 = arith.addf %124, %122 : vector<8x8xf32>
    %126 = arith.addf %125, %123 : vector<8x8xf32>
    %127 = tpu.reciprocal %119 {approx = true} : vector<8x1xf32> -> vector<8x1xf32>
    %128 = vector.broadcast %127 : vector<8x1xf32> to vector<8x8xf32>
    %129 = arith.mulf %126, %128 : vector<8x8xf32>
    %130 = arith.addf %18, %129 : vector<8x8xf32>
    %cst_51 = arith.constant 0.176776692 : f32
    %131 = vector.broadcast %cst_51 : f32 to vector<8x8xf32>
    %132 = arith.mulf %19, %131 : vector<8x8xf32>
    %cst_52 = arith.constant dense<0.000000e+00> : vector<8x16xf32>
    %133 = tpu.matmul %132, %21, %cst_52 {dimension_numbers = #tpu.dot_dimension_numbers<[1], [1], [0], [0], [0, 0, 1, 0], [], []>} : vector<8x8xf32>, vector<16x8xf32>, vector<8x16xf32> -> vector<8x16xf32>
    %cst_53 = arith.constant dense<0.000000e+00> : vector<8x16xf32>
    %134 = tpu.matmul %132, %22, %cst_53 {dimension_numbers = #tpu.dot_dimension_numbers<[1], [1], [0], [0], [0, 0, 1, 0], [], []>} : vector<8x8xf32>, vector<16x8xf32>, vector<8x16xf32> -> vector<8x16xf32>
    %cst_54 = arith.constant dense<0.000000e+00> : vector<8x16xf32>
    %135 = tpu.matmul %132, %23, %cst_54 {dimension_numbers = #tpu.dot_dimension_numbers<[1], [1], [0], [0], [0, 0, 1, 0], [], []>} : vector<8x8xf32>, vector<16x8xf32>, vector<8x16xf32> -> vector<8x16xf32>
    %cst_55 = arith.constant dense<0.000000e+00> : vector<8x16xf32>
    %136 = tpu.matmul %132, %24, %cst_55 {dimension_numbers = #tpu.dot_dimension_numbers<[1], [1], [0], [0], [0, 0, 1, 0], [], []>} : vector<8x8xf32>, vector<16x8xf32>, vector<8x16xf32> -> vector<8x16xf32>
    %cst_56 = arith.constant dense<0xFF800000> : vector<8xf32>
    %137 = vector.multi_reduction <maximumf>, %133, %cst_56 [1] : vector<8x16xf32> to vector<8xf32>
    %138 = vector.shape_cast %137 : vector<8xf32> to vector<8x1xf32>
    %cst_57 = arith.constant dense<0xFF800000> : vector<8xf32>
    %139 = vector.multi_reduction <maximumf>, %134, %cst_57 [1] : vector<8x16xf32> to vector<8xf32>
    %140 = vector.shape_cast %139 : vector<8xf32> to vector<8x1xf32>
    %cst_58 = arith.constant dense<0xFF800000> : vector<8xf32>
    %141 = vector.multi_reduction <maximumf>, %135, %cst_58 [1] : vector<8x16xf32> to vector<8xf32>
    %142 = vector.shape_cast %141 : vector<8xf32> to vector<8x1xf32>
    %cst_59 = arith.constant dense<0xFF800000> : vector<8xf32>
    %143 = vector.multi_reduction <maximumf>, %136, %cst_59 [1] : vector<8x16xf32> to vector<8xf32>
    %144 = vector.shape_cast %143 : vector<8xf32> to vector<8x1xf32>
    %145 = arith.maximumf %138, %140 : vector<8x1xf32>
    %146 = arith.maximumf %145, %142 : vector<8x1xf32>
    %147 = arith.maximumf %146, %144 : vector<8x1xf32>
    %148 = vector.broadcast %147 : vector<8x1xf32> to vector<8x16xf32>
    %149 = arith.subf %133, %148 : vector<8x16xf32>
    %150 = math.exp %149 : vector<8x16xf32>
    %151 = vector.broadcast %147 : vector<8x1xf32> to vector<8x16xf32>
    %152 = arith.subf %134, %151 : vector<8x16xf32>
    %153 = math.exp %152 : vector<8x16xf32>
    %154 = vector.broadcast %147 : vector<8x1xf32> to vector<8x16xf32>
    %155 = arith.subf %135, %154 : vector<8x16xf32>
    %156 = math.exp %155 : vector<8x16xf32>
    %157 = vector.broadcast %147 : vector<8x1xf32> to vector<8x16xf32>
    %158 = arith.subf %136, %157 : vector<8x16xf32>
    %159 = math.exp %158 : vector<8x16xf32>
    %cst_60 = arith.constant dense<0.000000e+00> : vector<8xf32>
    %160 = vector.multi_reduction <add>, %150, %cst_60 [1] : vector<8x16xf32> to vector<8xf32>
    %161 = vector.shape_cast %160 : vector<8xf32> to vector<8x1xf32>
    %cst_61 = arith.constant dense<0.000000e+00> : vector<8xf32>
    %162 = vector.multi_reduction <add>, %153, %cst_61 [1] : vector<8x16xf32> to vector<8xf32>
    %163 = vector.shape_cast %162 : vector<8xf32> to vector<8x1xf32>
    %cst_62 = arith.constant dense<0.000000e+00> : vector<8xf32>
    %164 = vector.multi_reduction <add>, %156, %cst_62 [1] : vector<8x16xf32> to vector<8xf32>
    %165 = vector.shape_cast %164 : vector<8xf32> to vector<8x1xf32>
    %cst_63 = arith.constant dense<0.000000e+00> : vector<8xf32>
    %166 = vector.multi_reduction <add>, %159, %cst_63 [1] : vector<8x16xf32> to vector<8xf32>
    %167 = vector.shape_cast %166 : vector<8xf32> to vector<8x1xf32>
    %168 = arith.addf %161, %163 : vector<8x1xf32>
    %169 = arith.addf %168, %165 : vector<8x1xf32>
    %170 = arith.addf %169, %167 : vector<8x1xf32>
    %cst_64 = arith.constant dense<0.000000e+00> : vector<8x8xf32>
    %171 = tpu.matmul %150, %25, %cst_64 {dimension_numbers = #tpu.dot_dimension_numbers<[1], [0], [0], [1], [0, 0, 1, 1], [], []>} : vector<8x16xf32>, vector<16x8xf32>, vector<8x8xf32> -> vector<8x8xf32>
    %cst_65 = arith.constant dense<0.000000e+00> : vector<8x8xf32>
    %172 = tpu.matmul %153, %26, %cst_65 {dimension_numbers = #tpu.dot_dimension_numbers<[1], [0], [0], [1], [0, 0, 1, 1], [], []>} : vector<8x16xf32>, vector<16x8xf32>, vector<8x8xf32> -> vector<8x8xf32>
    %cst_66 = arith.constant dense<0.000000e+00> : vector<8x8xf32>
    %173 = tpu.matmul %156, %27, %cst_66 {dimension_numbers = #tpu.dot_dimension_numbers<[1], [0], [0], [1], [0, 0, 1, 1], [], []>} : vector<8x16xf32>, vector<16x8xf32>, vector<8x8xf32> -> vector<8x8xf32>
    %cst_67 = arith.constant dense<0.000000e+00> : vector<8x8xf32>
    %174 = tpu.matmul %159, %28, %cst_67 {dimension_numbers = #tpu.dot_dimension_numbers<[1], [0], [0], [1], [0, 0, 1, 1], [], []>} : vector<8x16xf32>, vector<16x8xf32>, vector<8x8xf32> -> vector<8x8xf32>
    %175 = arith.addf %171, %172 : vector<8x8xf32>
    %176 = arith.addf %175, %173 : vector<8x8xf32>
    %177 = arith.addf %176, %174 : vector<8x8xf32>
    %178 = tpu.reciprocal %170 {approx = true} : vector<8x1xf32> -> vector<8x1xf32>
    %179 = vector.broadcast %178 : vector<8x1xf32> to vector<8x8xf32>
    %180 = arith.mulf %177, %179 : vector<8x8xf32>
    %181 = arith.addf %19, %180 : vector<8x8xf32>
    %cst_68 = arith.constant 0.176776692 : f32
    %182 = vector.broadcast %cst_68 : f32 to vector<8x8xf32>
    %183 = arith.mulf %20, %182 : vector<8x8xf32>
    %cst_69 = arith.constant dense<0.000000e+00> : vector<8x16xf32>
    %184 = tpu.matmul %183, %21, %cst_69 {dimension_numbers = #tpu.dot_dimension_numbers<[1], [1], [0], [0], [0, 0, 1, 0], [], []>} : vector<8x8xf32>, vector<16x8xf32>, vector<8x16xf32> -> vector<8x16xf32>
    %cst_70 = arith.constant dense<0.000000e+00> : vector<8x16xf32>
    %185 = tpu.matmul %183, %22, %cst_70 {dimension_numbers = #tpu.dot_dimension_numbers<[1], [1], [0], [0], [0, 0, 1, 0], [], []>} : vector<8x8xf32>, vector<16x8xf32>, vector<8x16xf32> -> vector<8x16xf32>
    %cst_71 = arith.constant dense<0.000000e+00> : vector<8x16xf32>
    %186 = tpu.matmul %183, %23, %cst_71 {dimension_numbers = #tpu.dot_dimension_numbers<[1], [1], [0], [0], [0, 0, 1, 0], [], []>} : vector<8x8xf32>, vector<16x8xf32>, vector<8x16xf32> -> vector<8x16xf32>
    %cst_72 = arith.constant dense<0.000000e+00> : vector<8x16xf32>
    %187 = tpu.matmul %183, %24, %cst_72 {dimension_numbers = #tpu.dot_dimension_numbers<[1], [1], [0], [0], [0, 0, 1, 0], [], []>} : vector<8x8xf32>, vector<16x8xf32>, vector<8x16xf32> -> vector<8x16xf32>
    %cst_73 = arith.constant dense<0xFF800000> : vector<8xf32>
    %188 = vector.multi_reduction <maximumf>, %184, %cst_73 [1] : vector<8x16xf32> to vector<8xf32>
    %189 = vector.shape_cast %188 : vector<8xf32> to vector<8x1xf32>
    %cst_74 = arith.constant dense<0xFF800000> : vector<8xf32>
    %190 = vector.multi_reduction <maximumf>, %185, %cst_74 [1] : vector<8x16xf32> to vector<8xf32>
    %191 = vector.shape_cast %190 : vector<8xf32> to vector<8x1xf32>
    %cst_75 = arith.constant dense<0xFF800000> : vector<8xf32>
    %192 = vector.multi_reduction <maximumf>, %186, %cst_75 [1] : vector<8x16xf32> to vector<8xf32>
    %193 = vector.shape_cast %192 : vector<8xf32> to vector<8x1xf32>
    %cst_76 = arith.constant dense<0xFF800000> : vector<8xf32>
    %194 = vector.multi_reduction <maximumf>, %187, %cst_76 [1] : vector<8x16xf32> to vector<8xf32>
    %195 = vector.shape_cast %194 : vector<8xf32> to vector<8x1xf32>
    %196 = arith.maximumf %189, %191 : vector<8x1xf32>
    %197 = arith.maximumf %196, %193 : vector<8x1xf32>
    %198 = arith.maximumf %197, %195 : vector<8x1xf32>
    %199 = vector.broadcast %198 : vector<8x1xf32> to vector<8x16xf32>
    %200 = arith.subf %184, %199 : vector<8x16xf32>
    %201 = math.exp %200 : vector<8x16xf32>
    %202 = vector.broadcast %198 : vector<8x1xf32> to vector<8x16xf32>
    %203 = arith.subf %185, %202 : vector<8x16xf32>
    %204 = math.exp %203 : vector<8x16xf32>
    %205 = vector.broadcast %198 : vector<8x1xf32> to vector<8x16xf32>
    %206 = arith.subf %186, %205 : vector<8x16xf32>
    %207 = math.exp %206 : vector<8x16xf32>
    %208 = vector.broadcast %198 : vector<8x1xf32> to vector<8x16xf32>
    %209 = arith.subf %187, %208 : vector<8x16xf32>
    %210 = math.exp %209 : vector<8x16xf32>
    %cst_77 = arith.constant dense<0.000000e+00> : vector<8xf32>
    %211 = vector.multi_reduction <add>, %201, %cst_77 [1] : vector<8x16xf32> to vector<8xf32>
    %212 = vector.shape_cast %211 : vector<8xf32> to vector<8x1xf32>
    %cst_78 = arith.constant dense<0.000000e+00> : vector<8xf32>
    %213 = vector.multi_reduction <add>, %204, %cst_78 [1] : vector<8x16xf32> to vector<8xf32>
    %214 = vector.shape_cast %213 : vector<8xf32> to vector<8x1xf32>
    %cst_79 = arith.constant dense<0.000000e+00> : vector<8xf32>
    %215 = vector.multi_reduction <add>, %207, %cst_79 [1] : vector<8x16xf32> to vector<8xf32>
    %216 = vector.shape_cast %215 : vector<8xf32> to vector<8x1xf32>
    %cst_80 = arith.constant dense<0.000000e+00> : vector<8xf32>
    %217 = vector.multi_reduction <add>, %210, %cst_80 [1] : vector<8x16xf32> to vector<8xf32>
    %218 = vector.shape_cast %217 : vector<8xf32> to vector<8x1xf32>
    %219 = arith.addf %212, %214 : vector<8x1xf32>
    %220 = arith.addf %219, %216 : vector<8x1xf32>
    %221 = arith.addf %220, %218 : vector<8x1xf32>
    %cst_81 = arith.constant dense<0.000000e+00> : vector<8x8xf32>
    %222 = tpu.matmul %201, %25, %cst_81 {dimension_numbers = #tpu.dot_dimension_numbers<[1], [0], [0], [1], [0, 0, 1, 1], [], []>} : vector<8x16xf32>, vector<16x8xf32>, vector<8x8xf32> -> vector<8x8xf32>
    %cst_82 = arith.constant dense<0.000000e+00> : vector<8x8xf32>
    %223 = tpu.matmul %204, %26, %cst_82 {dimension_numbers = #tpu.dot_dimension_numbers<[1], [0], [0], [1], [0, 0, 1, 1], [], []>} : vector<8x16xf32>, vector<16x8xf32>, vector<8x8xf32> -> vector<8x8xf32>
    %cst_83 = arith.constant dense<0.000000e+00> : vector<8x8xf32>
    %224 = tpu.matmul %207, %27, %cst_83 {dimension_numbers = #tpu.dot_dimension_numbers<[1], [0], [0], [1], [0, 0, 1, 1], [], []>} : vector<8x16xf32>, vector<16x8xf32>, vector<8x8xf32> -> vector<8x8xf32>
    %cst_84 = arith.constant dense<0.000000e+00> : vector<8x8xf32>
    %225 = tpu.matmul %210, %28, %cst_84 {dimension_numbers = #tpu.dot_dimension_numbers<[1], [0], [0], [1], [0, 0, 1, 1], [], []>} : vector<8x16xf32>, vector<16x8xf32>, vector<8x8xf32> -> vector<8x8xf32>
    %226 = arith.addf %222, %223 : vector<8x8xf32>
    %227 = arith.addf %226, %224 : vector<8x8xf32>
    %228 = arith.addf %227, %225 : vector<8x8xf32>
    %229 = tpu.reciprocal %221 {approx = true} : vector<8x1xf32> -> vector<8x1xf32>
    %230 = vector.broadcast %229 : vector<8x1xf32> to vector<8x8xf32>
    %231 = arith.mulf %228, %230 : vector<8x8xf32>
    %232 = arith.addf %20, %231 : vector<8x8xf32>
    %233 = tpu.concatenate %79, %130, %181, %232 in 1 : vector<8x8xf32>, vector<8x8xf32>, vector<8x8xf32>, vector<8x8xf32> -> vector<8x32xf32>
    %c0_85 = arith.constant 0 : index
    %c0_86 = arith.constant 0 : index
    %234 = vector.load %arg9[%c0_85, %c0_86] : memref<32x32xf32, #tpu.memory_space<vmem>>, vector<32x32xf32>
    %cst_87 = arith.constant dense<0.000000e+00> : vector<8x32xf32>
    %235 = tpu.matmul %233, %234, %cst_87 {dimension_numbers = #tpu.dot_dimension_numbers<[1], [0], [0], [1], [0, 0, 1, 1], [], []>} : vector<8x32xf32>, vector<32x32xf32>, vector<8x32xf32> -> vector<8x32xf32>
    %c0_88 = arith.constant 0 : index
    %c0_89 = arith.constant 0 : index
    %236 = vector.load %arg10[%c0_88, %c0_89] : memref<1x32xf32, #tpu.memory_space<vmem>>, vector<1x32xf32>
    %237 = vector.broadcast %236 : vector<1x32xf32> to vector<8x32xf32>
    %238 = arith.addf %235, %237 : vector<8x32xf32>
    %cst_90 = arith.constant 0.000000e+00 : f32
    %239 = vector.broadcast %cst_90 : f32 to vector<8x32xf32>
    %240 = arith.maximumf %238, %239 : vector<8x32xf32>
    %241 = arith.addf %233, %240 : vector<8x32xf32>
    %c0_91 = arith.constant 0 : index
    %c0_92 = arith.constant 0 : index
    %242 = vector.load %arg15[%c0_91, %c0_92] : memref<8x32xf32, #tpu.memory_space<vmem>>, vector<8x32xf32>
    tpu.vector_store %arg15[%c0_91, %c0_92], %241 {strides = array<i32>} : memref<8x32xf32, #tpu.memory_space<vmem>>, vector<8x32xf32>,
    return
  }
  func.func @transform_0(%arg0: i32) -> (i32, i32) {
    %c0_i32 = arith.constant 0 : i32
    %c0_i32_0 = arith.constant 0 : i32
    return %arg0, %c0_i32 : i32, i32
  }
  func.func @transform_1(%arg0: i32) -> (i32, i32) {
    %c0_i32 = arith.constant 0 : i32
    %c0_i32_0 = arith.constant 0 : i32
    %c0_i32_1 = arith.constant 0 : i32
    return %c0_i32, %c0_i32_0 : i32, i32
  }
  func.func @transform_2(%arg0: i32) -> (i32, i32) {
    %c0_i32 = arith.constant 0 : i32
    %c0_i32_0 = arith.constant 0 : i32
    %c0_i32_1 = arith.constant 0 : i32
    return %c0_i32, %c0_i32_0 : i32, i32
  }
  func.func @transform_3(%arg0: i32) -> (i32, i32) {
    %c0_i32 = arith.constant 0 : i32
    %c0_i32_0 = arith.constant 0 : i32
    %c0_i32_1 = arith.constant 0 : i32
    return %c0_i32, %c0_i32_0 : i32, i32
  }
  func.func @transform_4(%arg0: i32) -> (i32, i32) {
    %c0_i32 = arith.constant 0 : i32
    %c0_i32_0 = arith.constant 0 : i32
    %c0_i32_1 = arith.constant 0 : i32
    return %c0_i32, %c0_i32_0 : i32, i32
  }
  func.func @transform_5(%arg0: i32) -> (i32, i32) {
    %c0_i32 = arith.constant 0 : i32
    %c0_i32_0 = arith.constant 0 : i32
    %c0_i32_1 = arith.constant 0 : i32
    return %c0_i32, %c0_i32_0 : i32, i32
  }
  func.func @transform_6(%arg0: i32) -> (i32, i32) {
    %c0_i32 = arith.constant 0 : i32
    %c0_i32_0 = arith.constant 0 : i32
    %c0_i32_1 = arith.constant 0 : i32
    return %c0_i32, %c0_i32_0 : i32, i32
  }
  func.func @transform_7(%arg0: i32) -> (i32, i32) {
    %c0_i32 = arith.constant 0 : i32
    %c0_i32_0 = arith.constant 0 : i32
    %c0_i32_1 = arith.constant 0 : i32
    return %c0_i32, %c0_i32_0 : i32, i32
  }
  func.func @transform_8(%arg0: i32) -> (i32, i32) {
    %c0_i32 = arith.constant 0 : i32
    %c0_i32_0 = arith.constant 0 : i32
    %c0_i32_1 = arith.constant 0 : i32
    return %c0_i32, %c0_i32_0 : i32, i32
  }
  func.func @transform_9(%arg0: i32) -> (i32, i32) {
    %c0_i32 = arith.constant 0 : i32
    %c0_i32_0 = arith.constant 0 : i32
    %c0_i32_1 = arith.constant 0 : i32
    return %c0_i32, %c0_i32_0 : i32, i32
  }
  func.func @transform_10(%arg0: i32) -> (i32, i32) {
    %c0_i32 = arith.constant 0 : i32
    %c0_i32_0 = arith.constant 0 : i32
    %c0_i32_1 = arith.constant 0 : i32
    return %c0_i32, %c0_i32_0 : i32, i32
  }
  func.func @transform_11(%arg0: i32) -> (i32, i32) {
    %c0_i32 = arith.constant 0 : i32
    %c0_i32_0 = arith.constant 0 : i32
    %c0_i32_1 = arith.constant 0 : i32
    return %c0_i32, %c0_i32_0 : i32, i32
  }
  func.func @transform_12(%arg0: i32) -> (i32, i32) {
    %c0_i32 = arith.constant 0 : i32
    %c0_i32_0 = arith.constant 0 : i32
    %c0_i32_1 = arith.constant 0 : i32
    return %c0_i32, %c0_i32_0 : i32, i32
  }
  func.func @transform_13(%arg0: i32) -> (i32, i32) {
    %c0_i32 = arith.constant 0 : i32
    %c0_i32_0 = arith.constant 0 : i32
    %c0_i32_1 = arith.constant 0 : i32
    return %c0_i32, %c0_i32_0 : i32, i32
  }
  func.func @transform_14(%arg0: i32) -> (i32, i32) {
    %c0_i32 = arith.constant 0 : i32
    %c0_i32_0 = arith.constant 0 : i32
    return %arg0, %c0_i32 : i32, i32
  }
}

</mosaic_0001>

<bundles_post_ra>
// kernel: tpu_custom_call.1
= control target key start
LH: loop header
LB: loop body
LE: loop exit
PB: predicated region body
PF: predicated region fallthrough
CT: control target
= control target key end

     0   :  { %19 = vsyncpa [#allocation3], 0  ;;  %s1993_s0 = inlined_call_operand.hbm [shape: f32[8,32], index: 0, kind: input, shape index: {}]   ;;  %s1994_s1 = inlined_call_operand.hbm [shape: f32[16,24], index: 1, kind: input, shape index: {}]   ;;  %s1995_s2 = inlined_call_operand.hbm [shape: f32[32,32], index: 2, kind: input, shape index: {}]   ;;  %s1996_s3 = inlined_call_operand.vmem [shape: f32[1,32], index: 3, kind: input, shape index: {}]   ;;  %s1997_s4 = inlined_call_operand.hbm [shape: f32[24,32], index: 4, kind: input, shape index: {}]   ;;  %s1998_s5 = inlined_call_operand.vmem [shape: f32[1,32], index: 5, kind: input, shape index: {}]   ;;  %s1999_s6 = inlined_call_operand.hbm [shape: f32[24,32], index: 6, kind: input, shape index: {}]   ;;  %s2000_s7 = inlined_call_operand.vmem [shape: f32[1,32], index: 7, kind: input, shape index: {}]   ;;  %s2001_s8 = inlined_call_operand.hbm [shape: f32[32,32], index: 8, kind: input, shape index: {}]   ;;  %s2002_s9 = inlined_call_operand.vmem [shape: f32[1,32], index: 9, kind: input, shape index: {}]   ;;  %s2003_s10 = inlined_call_operand.vmem [shape: f32[1,32], index: 10, kind: input, shape index: {}]   ;;  %s2004_s11 = inlined_call_operand.vmem [shape: f32[1,32], index: 11, kind: input, shape index: {}]   ;;  %s2005_s12 = inlined_call_operand.vmem [shape: f32[1,32], index: 12, kind: input, shape index: {}]   ;;  %s2006_s13 = inlined_call_operand.vmem [shape: f32[1,32], index: 13, kind: input, shape index: {}]   ;;  %s2007_s14 = inlined_call_operand.hbm [shape: f32[8,32], index: 14, kind: output, shape index: {}]  }
   0x1   :  { %20 = vsyncpa [#allocation6], 0 }
   0x2   :  { %21 = vsyncpa [#allocation9], 0 }
   0x3   :  { %22 = vsyncpa [#allocation12], 0  ;;  %s39_s10 = sshll.u32 %s1994_s1, 4  ;;  %s40_s10 = int_to_ptr.hbm [resolvable:$true] %s39_s10 }
   0x4   :  { %23 = vsyncpa [#allocation4], 0  ;;  %s1576_s11 = smov [#allocation5]   ;;  %s67_s13 = sshll.u32 %s1997_s4, 4  ;;  %s68_s13 = int_to_ptr.hbm [resolvable:$true] %s67_s13 }
   0x5   :  { %s41_s15 = sshll.u32 %s1576_s11, 4  ;;  %s1577_s17 = smov 128   ;;  %s42_s15 = int_to_ptr.vmem [resolvable:$true] %s41_s15 }
   0x6   :  { %s1578_s18 = smov 8   ;;  %s1579_s19 = smov [#allocation8]  }
   0x7   :  { %47 = dma.hbm_to_vmem [thread:$0]  %s40_s10, 256, %s42_s15, [#allocation6], %s1577_s17, %s1577_s17, %s1578_s18  }
   0x8   :  { %s69_s20 = sshll.u32 %s1579_s19, 4  ;;  %s29_s22 = sshll.u32 %s1993_s0, 4  ;;  %s70_s20 = int_to_ptr.vmem [resolvable:$true] %s69_s20  ;;  %s30_s22 = int_to_ptr.hbm [resolvable:$true] %s29_s22 }
   0x9   :  { %75 = dma.hbm_to_vmem [thread:$0]  %s68_s13, 384, %s70_s20, [#allocation9], %s1577_s17, %s1577_s17, %s1578_s18  }
   0xa   :  { %s52_s24 = sshll.u32 %s1995_s2, 4  ;;  %s1580_s25 = smov [#allocation2]   ;;  %s53_s24 = int_to_ptr.hbm [resolvable:$true] %s52_s24 }
   0xb   :  { %s31_s26 = sshll.u32 %s1580_s25, 4  ;;  %s1581_s27 = smov [#allocation7]   ;;  %s32_s26 = int_to_ptr.vmem [resolvable:$true] %s31_s26 }
   0xc   :  { %34 = dma.hbm_to_vmem [thread:$0]  %s30_s22, 128, %s32_s26, [#allocation3]  }
   0xd   :  { %s54_s28 = sshll.u32 %s1581_s27, 4  ;;  %s82_s0 = sshll.u32 %s1999_s6, 4  ;;  %s55_s28 = int_to_ptr.vmem [resolvable:$true] %s54_s28  ;;  %s83_s0 = int_to_ptr.hbm [resolvable:$true] %s82_s0 }
   0xe   :  { %60 = dma.hbm_to_vmem [thread:$0]  %s53_s24, 512, %s55_s28, [#allocation6], %s1577_s17, %s1577_s17, %s1578_s18  }
   0xf   :  { %s97_s2 = sshll.u32 %s2001_s8, 4  ;;  %s1582_s15 = smov [#allocation10]   ;;  %s98_s2 = int_to_ptr.hbm [resolvable:$true] %s97_s2 }
  0x10   :  { %s84_s12 = sshll.u32 %s1582_s15, 4  ;;  %s1583_s16 = smov [#allocation11]   ;;  %s85_s12 = int_to_ptr.vmem [resolvable:$true] %s84_s12 }
  0x11   :  { %90 = dma.hbm_to_vmem [thread:$0]  %s83_s0, 384, %s85_s12, [#allocation9], %s1577_s17, %s1577_s17, %s1578_s18  }
  0x12   :  { %s99_s6 = sshll.u32 %s1583_s16, 4  ;;  %s100_s6 = int_to_ptr.vmem [resolvable:$true] %s99_s6 }
  0x13   :  { %105 = dma.hbm_to_vmem [thread:$0]  %s98_s2, 512, %s100_s6, [#allocation12], %s1577_s17, %s1577_s17, %s1578_s18  }
  0x14   :  { %1566 = dma.done.wait [#allocation3], 128  }
  0x15   :  { %1567 = vsyncadd [#allocation3], 4294967168 }
  0x16   :  { %1568 = dma.done.wait [#allocation6], 768  }
  0x17   :  { %1569 = vsyncadd [#allocation6], 4294966528 }
  0x18   :  { %1570 = dma.done.wait [#allocation9], 768  }
  0x19   :  { %1571 = vsyncadd [#allocation9], 4294966528 }
  0x1a   :  { %1572 = dma.done.wait [#allocation12], 512  }
  0x1b   :  { %1573 = vsyncadd [#allocation12], 4294966784  ;;  %v177_v0 = vld [vmem:[#allocation8 + $0x10] sm:$0xff]  ;;  %v176_v1 = vld [vmem:[#allocation8 + $0x8] sm:$0xff]  ;;  %vm182_vm0 = vcmask 195584   ;;  %vm151_vm1 = vcmask 261120  }
  0x1c   :  { %202 = vmatpush.msra.mxu1 %v177_v0  ;;  %v214_v2 = vld [vmem:[#allocation10 + $0x10] sm:$0xff]  ;;  %v213_v3 = vld [vmem:[#allocation10 + $0x8] sm:$0xff]  ;;  %v146_v5 = vld [vmem:[#allocation7 + $0x18] sm:$0xff]  ;;  %s1584_s17 = smov 112   ;;  %vm243_vm2 = vcmask 64512   ;;  %s1585_s21 = smov 104  }
  0x1d   :  { %v175_v4 = vld [vmem:[#allocation8] sm:$0xff]  ;;  %232 = vmatpush.msra.mxu2 %v214_v2  ;;  %v145_v6 = vld [vmem:[#allocation7 + $0x10] sm:$0xff]  ;;  %167 = vmatpush.msra.mxu0 %v146_v5  ;;  %v212_v8 = vld [vmem:[#allocation10] sm:$0xff]  ;;  %vm357_vm3 = vcmask 130048   ;;  %s1589_s23 = smov [#allocation13]   ;;  %s1242_s27 = sshll.u32 %s2007_s14, 4  ;;  %s1243_s27 = int_to_ptr.hbm [resolvable:$true] %s1242_s27 }
  0x1e   :  { %203 = vmatpush.msra.mxu1 %v176_v1  ;;  %v141_v7 = vld [vmem:[#allocation5] sm:$0xff]  ;;  %v144_v9 = vld [vmem:[#allocation7 + $0x8] sm:$0xff]  ;;  %v143_v10 = vld [vmem:[#allocation7] sm:$0xff]  ;;  %s1240_s24 = sshll.u32 %s1589_s23, 4  ;;  %s1241_s24 = int_to_ptr.vmem [resolvable:$true] %s1240_s24 }
  0x1f   :  { %233 = vmatpush.msra.mxu2 %v213_v3  ;;  %168 = vmatpush.msra.mxu0 %v145_v6  ;;  %v140_v11 = vld [vmem:[#allocation2] sm:$0xff]  ;;  %v142_v12 = vld [vmem:[#allocation5 + $0x8] sm:$0xff] }
  0x20   :  { %204 = vmatpush.msra.mxu1 %v175_v4  ;;  %v1354_v13 = vld [vmem:[%s1998_s5] ss:$0 sm:$0xff]  ;;  %s1586_s5 = smov 120  }
  0x21   :  { %1256 = vmatmul.msk.f32.vlgmr.msra.gmra.mxu1 %vm182_vm0, %v141_v7  ;;  %234 = vmatpush.msra.mxu2 %v212_v8  ;;  %v1355_v16 = vld [vmem:[%s1996_s3] ss:$0 sm:$0xff] }
  0x22   :  { %1258 = vmatmul.msk.f32.vlgmr.msra.gmra.mxu2 %vm182_vm0, %v141_v7  ;;  %169 = vmatpush.msra.mxu0 %v144_v9  ;;  %v1356_v23 = vld [vmem:[%s2000_s7] ss:$0 sm:$0xff]  ;;  %s1587_s7 = smov 16  }
  0x24   :  { %170 = vmatpush.msra.mxu0 %v143_v10 }
  0x25   :  { %1255 = vmatmul.msk.f32.vlgmr.msra.gmra.mxu0 %vm151_vm1, %v140_v11 }
  0x29   :  { %1257 = vmatmul.msk.f32.gmra.mxu1 %vm182_vm0, %v142_v12 }
  0x2a   :  { %1259 = vmatmul.msk.f32.gmra.mxu2 %vm182_vm0, %v142_v12 }
  0x9e   :  { %v206_v14 = vpop.f32.mrf.mxu1 }
  0x9f   :  { %v1706_v15 = vadd.f32 %v1354_v13, %v206_v14 }
  0xa1   :  { %301 = vrot.lane.b32.xlu1 %v1706_v15, %s1584_s17 }
  0xa2   :  { %v172_v19 = vpop.f32.mrf.mxu0 }
  0xa3   :  { %v1719_v21 = vadd.f32 %v1355_v16, %v172_v19 }
  0xa5   :  { %v236_v17 = vpop.f32.mrf.mxu2  ;;  %v1726_v22 = vmul.f32 0.17677669, %v1719_v21 }
  0xa6   :  { %v209_v18 = vpop.f32.mrf.mxu1  ;;  %v1733_v25 = vadd.f32 %v1356_v23, %v236_v17 }
  0xa7   :  { %v1713_v20 = vadd.f32 %v1354_v13, %v209_v18 }
  0xa9   :  { %331 = vrot.lane.b32.xlu2 %v1713_v20, %s1585_s21  ;;  %303 = vrot.lane.b32.xlu0 %v1713_v20, %s1584_s17 }
  0xaa   :  { %1260 = vmatpush.xpose.msk.msra.mxu3 %vm243_vm2, %v1713_v20  ;;  %273 = vrot.lane.b32.xlu1 %v1706_v15, %s1586_s5 }
  0xad   :  { %v239_v24 = vpop.f32.mrf.mxu2 }
  0xae   :  { %1261 = vmatpush.xpose.msk.msra.mxu3 %vm243_vm2, %v1706_v15  ;;  %v1739_v26 = vadd.f32 %v1356_v23, %v239_v24 }
  0xb0   :  { %v1339_v27 = vpack.i.bf16 %v1733_v25, %v1739_v26 }
  0xb1   :  { %1262 = vmatmul.msk.f32.vlgmr.msra.gmra.mxu3 %vm243_vm2, %v1726_v22  ;;  %275 = vrot.lane.b32.xlu0 %v1713_v20, %s1586_s5 }
  0xb2   :  { %329 = vrot.lane.b32.xlu2 %v1706_v15, %s1585_s21 }
  0xb9   :  { %1340 = vrot.lane.b32.xlu0 %v1339_v27, %s1586_s5 }
 0x103   :  { %v1746_v28 = vpop.permute.xlu2 %331 }
 0x104   :  { %1269 = vmatpush.xpose.msk.msrb.mxu1 %vm243_vm2, %v1746_v28 }
 0x10c   :  { %v1750_v29 = vpop.permute.xlu2 %329 }
 0x10d   :  { %1270 = vmatpush.xpose.msk.msrb.mxu1 %vm243_vm2, %v1750_v29 }
 0x110   :  { %1271 = vmatmul.msk.f32.vlgmr.msrb.gmra.mxu1 %vm243_vm2, %v1726_v22 }
 0x111   :  { %506 = vmatpush.msra.mxu1 %v1739_v26 }
 0x113   :  { %507 = vmatpush.msra.mxu1 %v1733_v25  ;;  %v1766_v31 = vpop.permute.xlu1 %301 }
 0x115   :  { %1285 = vmatpush.xpose.msk.msrb.mxu1 %vm243_vm2, %v1746_v28 }
 0x119   :  { %1286 = vmatpush.xpose.msk.msrb.mxu1 %vm243_vm2, %v1750_v29 }
 0x11b   :  { %v1762_v30 = vpop.permute.xlu0 %303 }
 0x11c   :  { %1266 = vmatpush.xpose.msk.msrb.mxu3 %vm243_vm2, %v1762_v30  ;;  %v1776_v33 = vpop.permute.xlu1 %273 }
 0x120   :  { %1267 = vmatpush.xpose.msk.msrb.mxu3 %vm243_vm2, %v1766_v31 }
 0x123   :  { %v1770_v32 = vpop.permute.xlu0 %275  ;;  %1268 = vmatmul.msk.f32.vlgmr.msrb.gmra.mxu3 %vm243_vm2, %v1726_v22 }
 0x124   :  { %1263 = vmatpush.xpose.msk.msrb.mxu0 %vm243_vm2, %v1770_v32 }
 0x128   :  { %1264 = vmatpush.xpose.msk.msrb.mxu0 %vm243_vm2, %v1776_v33 }
 0x12b   :  { %v1341_v34 = vpop.permute.xlu0 %1340  ;;  %1265 = vmatmul.msk.f32.vlgmr.msrb.gmra.mxu0 %vm243_vm2, %v1726_v22 }
 0x12c   :  { %v1782_v35 = vunpack.i.h.bf16 %v1341_v34  ;;  %v1784_v36 = vunpack.i.l.bf16 %v1341_v34 }
 0x12e   :  { %425 = vmatpush.msrb.mxu2 %v1784_v36 }
 0x130   :  { %426 = vmatpush.msrb.mxu2 %v1782_v35 }
 0x132   :  { %1276 = vmatpush.xpose.msk.msra.mxu2 %vm243_vm2, %v1713_v20 }
 0x134   :  { %v270_v37 = vpop.f32.mrf.mxu3 }
 0x135   :  { %v358_v38 = vsel %vm357_vm3, %v270_v37, -inf }
 0x136   :  { %1277 = vmatpush.xpose.msk.msra.mxu2 %vm243_vm2, %v1706_v15  ;;  %359 = vmax.xlane.f32.xlu0 %v358_v38 }
 0x14a   :  { %517 = vrot.lane.b32.xlu0 %v1726_v22, %s1586_s5 }
 0x18d   :  { %v354_v39 = vpop.f32.mrf.mxu1 }
 0x18e   :  { %v367_v40 = vsel %vm357_vm3, %v354_v39, -inf }
 0x18f   :  { %368 = vmax.xlane.f32.xlu2 %v367_v40 }
 0x1a6   :  { %v326_v41 = vpop.f32.mrf.mxu3 }
 0x1a7   :  { %v364_v42 = vsel %vm357_vm3, %v326_v41, -inf }
 0x1a8   :  { %v298_v43 = vpop.f32.mrf.mxu0  ;;  %365 = vmax.xlane.f32.xlu2 %v364_v42 }
 0x1a9   :  { %v361_v44 = vsel %vm357_vm3, %v298_v43, -inf  ;;  %v360_v47 = vpop.xlane.xlu0 %359 }
 0x1aa   :  { %362 = vmax.xlane.f32.xlu1 %v361_v44 }
 0x1bc   :  { %v518_v3 = vpop.permute.xlu0 %517 }
 0x1c0   :  { %1350 = vrot.lane.b32.xlu2 %v1339_v27, %s1584_s17 }
 0x1c3   :  { %1345 = vrot.lane.b32.xlu1 %v1339_v27, %s1585_s21 }
 0x202   :  { %v369_v45 = vpop.xlane.xlu2 %368 }
 0x21b   :  { %v366_v46 = vpop.xlane.xlu2 %365 }
 0x21d   :  { %v363_v48 = vpop.xlane.xlu1 %362 }
 0x21e   :  { %v370_v49 = vmax.f32 %v360_v47, %v363_v48 }
 0x220   :  { %v371_v50 = vmax.f32 %v370_v49, %v366_v46 }
 0x222   :  { %v372_v51 = vmax.f32 %v371_v50, %v369_v45 }
 0x223   :  { %v1351_v52 = vpop.permute.xlu2 %1350 }
 0x224   :  { %v373_v53 = vsub.f32 %v270_v37, %v372_v51  ;;  %v376_v54 = vsub.f32 %v298_v43, %v372_v51  ;;  %v379_v55 = vsub.f32 %v326_v41, %v372_v51  ;;  %v1800_v56 = vunpack.i.l.bf16 %v1351_v52 }
 0x225   :  { %v1802_v60 = vunpack.i.h.bf16 %v1351_v52  ;;  %v382_v62 = vsub.f32 %v354_v39, %v372_v51 }
 0x226   :  { %v374_v57 = vmul.f32 1.442695, %v373_v53  ;;  %v377_v58 = vmul.f32 1.442695, %v376_v54  ;;  %v380_v59 = vmul.f32 1.442695, %v379_v55  ;;  %454 = vmatpush.msra.mxu0 %v1800_v56 }
 0x227   :  { %v383_v1 = vmul.f32 1.442695, %v382_v62 }
 0x228   :  { %1358 = vpow2.f32 %v374_v57  ;;  %455 = vmatpush.msra.mxu0 %v1802_v60 }
 0x229   :  { %1360 = vpow2.f32 %v377_v58 }
 0x22a   :  { %1362 = vpow2.f32 %v380_v59  ;;  %1279 = vmatpush.xpose.msk.msrb.mxu0 %vm243_vm2, %v1770_v32 }
 0x22b   :  { %1364 = vpow2.f32 %v383_v1 }
 0x22e   :  { %v1808_v61 = vpop.eup %1358  ;;  %1280 = vmatpush.xpose.msk.msrb.mxu0 %vm243_vm2, %v1776_v33 }
 0x22f   :  { %v1812_v63 = vpop.eup %1360  ;;  %1275 = vmatmul.msk.f32.vlgmr.msra.gmra.mxu1 %vm357_vm3, %v1808_v61 }
 0x230   :  { %v1816_v0 = vpop.eup %1362  ;;  %1272 = vmatmul.msk.f32.vlgmr.msrb.gmra.mxu2 %vm357_vm3, %v1812_v63  ;;  %729 = vmatpush.msra.mxu1 %v1739_v26 }
 0x231   :  { %1273 = vmatmul.msk.f32.vlgmr.msra.gmra.mxu0 %vm357_vm3, %v1816_v0  ;;  %660 = vmatpush.msrb.mxu2 %v1784_v36  ;;  %v1842_v6 = vpop.eup %1364 }
 0x232   :  { %683 = vmatpush.msra.mxu0 %v1800_v56  ;;  %730 = vmatpush.msra.mxu1 %v1733_v25 }
 0x233   :  { %661 = vmatpush.msrb.mxu2 %v1782_v35 }
 0x234   :  { %684 = vmatpush.msra.mxu0 %v1802_v60 }
 0x235   :  { %v1346_v2 = vpop.permute.xlu1 %1345 }
 0x236   :  { %v1828_v4 = vunpack.i.l.bf16 %v1346_v2  ;;  %v1837_v5 = vunpack.i.h.bf16 %v1346_v2 }
 0x237   :  { %1287 = vmatmul.msk.f32.vlgmr.msrb.gmra.mxu1 %vm243_vm2, %v518_v3 }
 0x238   :  { %1278 = vmatmul.msk.f32.vlgmr.msra.gmra.mxu2 %vm243_vm2, %v518_v3  ;;  %1301 = vmatpush.xpose.msk.msrb.mxu1 %vm243_vm2, %v1746_v28 }
 0x239   :  { %1281 = vmatmul.msk.f32.vlgmr.msrb.gmra.mxu0 %vm243_vm2, %v518_v3  ;;  %1292 = vmatpush.xpose.msk.msra.mxu2 %vm243_vm2, %v1713_v20 }
 0x23a   :  { %1295 = vmatpush.xpose.msk.msrb.mxu0 %vm243_vm2, %v1770_v32  ;;  %483 = vmatpush.msra.mxu3 %v1828_v4 }
 0x23c   :  { %484 = vmatpush.msra.mxu3 %v1837_v5  ;;  %1302 = vmatpush.xpose.msk.msrb.mxu1 %vm243_vm2, %v1750_v29 }
 0x23d   :  { %1274 = vmatmul.msk.f32.vlgmr.msra.gmra.mxu3 %vm357_vm3, %v1842_v6  ;;  %1293 = vmatpush.xpose.msk.msra.mxu2 %vm243_vm2, %v1706_v15 }
 0x23e   :  { %1282 = vmatpush.xpose.msk.msrb.mxu3 %vm243_vm2, %v1762_v30  ;;  %1296 = vmatpush.xpose.msk.msrb.mxu0 %vm243_vm2, %v1776_v33 }
 0x242   :  { %1283 = vmatpush.xpose.msk.msrb.mxu3 %vm243_vm2, %v1766_v31 }
 0x245   :  { %1284 = vmatmul.msk.f32.vlgmr.msrb.gmra.mxu3 %vm243_vm2, %v518_v3 }
 0x246   :  { %706 = vmatpush.msra.mxu3 %v1828_v4 }
 0x248   :  { %707 = vmatpush.msra.mxu3 %v1837_v5 }
 0x24a   :  { %1298 = vmatpush.xpose.msk.msrb.mxu3 %vm243_vm2, %v1762_v30 }
 0x24e   :  { %1299 = vmatpush.xpose.msk.msrb.mxu3 %vm243_vm2, %v1766_v31 }
 0x2ac   :  { %v509_v8 = vpop.f32.mrf.mxu1 }
 0x2ae   :  { %v457_v7 = vpop.f32.mrf.mxu0 }
 0x2b3   :  { %v428_v9 = vpop.f32.mrf.mxu2 }
 0x2b4   :  { %v510_v10 = vadd.f32 %v509_v8, %v428_v9  ;;  %v598_v18 = vpop.f32.mrf.mxu1 }
 0x2b5   :  { %v610_v23 = vsel %vm357_vm3, %v598_v18, -inf }
 0x2b6   :  { %v558_v11 = vpop.f32.mrf.mxu0  ;;  %v512_v12 = vadd.f32 %v510_v10, %v457_v7 }
 0x2b7   :  { %v604_v13 = vsel %vm357_vm3, %v558_v11, -inf }
 0x2b8   :  { %605 = vmax.xlane.f32.xlu0 %v604_v13 }
 0x2bb   :  { %v538_v14 = vpop.f32.mrf.mxu2 }
 0x2bc   :  { %v601_v16 = vsel %vm357_vm3, %v538_v14, -inf }
 0x2bd   :  { %602 = vmax.xlane.f32.xlu1 %v601_v16 }
 0x2c0   :  { %v486_v17 = vpop.f32.mrf.mxu3 }
 0x2c1   :  { %v1866_v19 = vadd.f32 %v512_v12, %v486_v17 }
 0x2c5   :  { %611 = vmax.xlane.f32.xlu1 %v610_v23 }
 0x2c8   :  { %v578_v24 = vpop.f32.mrf.mxu3 }
 0x2c9   :  { %v607_v27 = vsel %vm357_vm3, %v578_v24, -inf }
 0x2ca   :  { %608 = vmax.xlane.f32.xlu2 %v607_v27 }
 0x2cc   :  { %744 = vrot.lane.b32.xlu0 %v1726_v22, %s1584_s17 }
 0x32b   :  { %v606_v37 = vpop.xlane.xlu0 %605 }
 0x330   :  { %v603_v34 = vpop.xlane.xlu1 %602 }
 0x331   :  { %v613_v38 = vmax.f32 %v603_v34, %v606_v37 }
 0x338   :  { %v612_v41 = vpop.xlane.xlu1 %611 }
 0x33d   :  { %v609_v39 = vpop.xlane.xlu2 %608 }
 0x33e   :  { %v614_v40 = vmax.f32 %v613_v38, %v609_v39  ;;  %v745_v55 = vpop.permute.xlu0 %744 }
 0x340   :  { %v615_v42 = vmax.f32 %v614_v40, %v612_v41 }
 0x342   :  { %v616_v43 = vsub.f32 %v538_v14, %v615_v42  ;;  %v619_v44 = vsub.f32 %v558_v11, %v615_v42  ;;  %v622_v45 = vsub.f32 %v578_v24, %v615_v42  ;;  %v625_v46 = vsub.f32 %v598_v18, %v615_v42 }
 0x344   :  { %v617_v47 = vmul.f32 1.442695, %v616_v43  ;;  %v620_v48 = vmul.f32 1.442695, %v619_v44  ;;  %v623_v49 = vmul.f32 1.442695, %v622_v45 }
 0x345   :  { %v626_v50 = vmul.f32 1.442695, %v625_v46 }
 0x346   :  { %1366 = vpow2.f32 %v617_v47 }
 0x347   :  { %1368 = vpow2.f32 %v620_v48 }
 0x348   :  { %1370 = vpow2.f32 %v623_v49 }
 0x349   :  { %1372 = vpow2.f32 %v626_v50 }
 0x34c   :  { %v1367_v51 = vpop.eup %1366 }
 0x34d   :  { %v1872_v52 = vpop.eup %1368  ;;  %1291 = vmatmul.msk.f32.vlgmr.msra.gmra.mxu1 %vm357_vm3, %v1367_v51  ;;  %v628_v7 = vsel %vm357_vm3, %v1367_v51, 0.0 }
 0x34e   :  { %v1875_v53 = vpop.eup %1370  ;;  %1288 = vmatmul.msk.f32.vlgmr.msrb.gmra.mxu2 %vm357_vm3, %v1872_v52  ;;  %956 = vmatpush.msra.mxu1 %v1739_v26  ;;  %v631_v51 = vsel %vm357_vm3, %v1872_v52, 0.0 }
 0x34f   :  { %v1880_v54 = vpop.eup %1372  ;;  %1289 = vmatmul.msk.f32.vlgmr.msra.gmra.mxu0 %vm357_vm3, %v1875_v53  ;;  %887 = vmatpush.msrb.mxu2 %v1784_v36  ;;  %v634_v48 = vsel %vm357_vm3, %v1875_v53, 0.0 }
 0x350   :  { %1290 = vmatmul.msk.f32.vlgmr.msra.gmra.mxu3 %vm357_vm3, %v1880_v54  ;;  %910 = vmatpush.msra.mxu0 %v1800_v56  ;;  %v637_v50 = vsel %vm357_vm3, %v1880_v54, 0.0 }
 0x351   :  { %933 = vmatpush.msra.mxu3 %v1828_v4  ;;  %888 = vmatpush.msrb.mxu2 %v1782_v35 }
 0x352   :  { %911 = vmatpush.msra.mxu0 %v1802_v60  ;;  %957 = vmatpush.msra.mxu1 %v1733_v25 }
 0x353   :  { %934 = vmatpush.msra.mxu3 %v1837_v5 }
 0x355   :  { %1303 = vmatmul.msk.f32.vlgmr.msrb.gmra.mxu1 %vm243_vm2, %v745_v55 }
 0x356   :  { %1294 = vmatmul.msk.f32.vlgmr.msra.gmra.mxu2 %vm243_vm2, %v745_v55  ;;  %1317 = vmatpush.xpose.msk.msrb.mxu1 %vm243_vm2, %v1746_v28 }
 0x357   :  { %1297 = vmatmul.msk.f32.vlgmr.msrb.gmra.mxu0 %vm243_vm2, %v745_v55  ;;  %1308 = vmatpush.xpose.msk.msra.mxu2 %vm243_vm2, %v1713_v20 }
 0x358   :  { %1300 = vmatmul.msk.f32.vlgmr.msrb.gmra.mxu3 %vm243_vm2, %v745_v55  ;;  %1311 = vmatpush.xpose.msk.msrb.mxu0 %vm243_vm2, %v1770_v32 }
 0x359   :  { %1314 = vmatpush.xpose.msk.msrb.mxu3 %vm243_vm2, %v1762_v30 }
 0x35a   :  { %1318 = vmatpush.xpose.msk.msrb.mxu1 %vm243_vm2, %v1750_v29 }
 0x35b   :  { %1309 = vmatpush.xpose.msk.msra.mxu2 %vm243_vm2, %v1706_v15 }
 0x35c   :  { %1312 = vmatpush.xpose.msk.msrb.mxu0 %vm243_vm2, %v1776_v33 }
 0x35d   :  { %1315 = vmatpush.xpose.msk.msrb.mxu3 %vm243_vm2, %v1766_v31 }
 0x3ca   :  { %v732_v28 = vpop.f32.mrf.mxu1 }
 0x3cc   :  { %v686_v20 = vpop.f32.mrf.mxu0 }
 0x3d1   :  { %v663_v57 = vpop.f32.mrf.mxu2 }
 0x3d2   :  { %v733_v58 = vadd.f32 %v732_v28, %v663_v57  ;;  %v825_v15 = vpop.f32.mrf.mxu1 }
 0x3d3   :  { %v709_v62 = vpop.f32.mrf.mxu3  ;;  %v837_v33 = vsel %vm357_vm3, %v825_v15, -inf }
 0x3d4   :  { %v735_v32 = vadd.f32 %v733_v58, %v686_v20  ;;  %v785_v59 = vpop.f32.mrf.mxu0 }
 0x3d5   :  { %v831_v30 = vsel %vm357_vm3, %v785_v59, -inf }
 0x3d6   :  { %v1914_v1 = vadd.f32 %v735_v32, %v709_v62  ;;  %832 = vmax.xlane.f32.xlu1 %v831_v30 }
 0x3d9   :  { %v765_v29 = vpop.f32.mrf.mxu2 }
 0x3da   :  { %v828_v2 = vsel %vm357_vm3, %v765_v29, -inf }
 0x3db   :  { %829 = vmax.xlane.f32.xlu2 %v828_v2  ;;  %v805_v31 = vpop.f32.mrf.mxu3 }
 0x3dc   :  { %v834_v3 = vsel %vm357_vm3, %v805_v31, -inf }
 0x3de   :  { %838 = vmax.xlane.f32.xlu1 %v837_v33 }
 0x3e3   :  { %835 = vmax.xlane.f32.xlu2 %v834_v3 }
 0x3fb   :  { %971 = vrot.lane.b32.xlu2 %v1726_v22, %s1585_s21 }
 0x424   :  { %629 = vadd.xlane.f32.xlu2 %v628_v7 }
 0x449   :  { %v833_v8 = vpop.xlane.xlu1 %832 }
 0x44e   :  { %v830_v9 = vpop.xlane.xlu2 %829 }
 0x44f   :  { %v840_v10 = vmax.f32 %v830_v9, %v833_v8 }
 0x451   :  { %v839_v13 = vpop.xlane.xlu1 %838 }
 0x456   :  { %v836_v11 = vpop.xlane.xlu2 %835 }
 0x457   :  { %v841_v12 = vmax.f32 %v840_v10, %v836_v11 }
 0x459   :  { %v842_v14 = vmax.f32 %v841_v12, %v839_v13 }
 0x45b   :  { %v843_v16 = vsub.f32 %v765_v29, %v842_v14  ;;  %v846_v17 = vsub.f32 %v785_v59, %v842_v14  ;;  %v849_v18 = vsub.f32 %v805_v31, %v842_v14  ;;  %v852_v23 = vsub.f32 %v825_v15, %v842_v14 }
 0x45d   :  { %v844_v24 = vmul.f32 1.442695, %v843_v16  ;;  %v847_v27 = vmul.f32 1.442695, %v846_v17  ;;  %v850_v34 = vmul.f32 1.442695, %v849_v18 }
 0x45e   :  { %v853_v37 = vmul.f32 1.442695, %v852_v23  ;;  %v385_v17 = vsel %vm357_vm3, %v1808_v61, 0.0 }
 0x45f   :  { %1374 = vpow2.f32 %v844_v24  ;;  %v388_v24 = vsel %vm357_vm3, %v1812_v63, 0.0 }
 0x460   :  { %1376 = vpow2.f32 %v847_v27  ;;  %v391_v27 = vsel %vm357_vm3, %v1816_v0, 0.0 }
 0x461   :  { %1378 = vpow2.f32 %v850_v34 }
 0x462   :  { %1380 = vpow2.f32 %v853_v37  ;;  %v394_v37 = vsel %vm357_vm3, %v1842_v6, 0.0 }
 0x465   :  { %v1375_v22 = vpop.eup %1374 }
 0x466   :  { %v1377_v38 = vpop.eup %1376  ;;  %1307 = vmatmul.msk.f32.vlgmr.msra.gmra.mxu1 %vm357_vm3, %v1375_v22  ;;  %v855_v55 = vsel %vm357_vm3, %v1375_v22, 0.0 }
 0x467   :  { %v1379_v39 = vpop.eup %1378  ;;  %1304 = vmatmul.msk.f32.vlgmr.msrb.gmra.mxu2 %vm357_vm3, %v1377_v38  ;;  %1183 = vmatpush.msra.mxu1 %v1739_v26  ;;  %v972_v26 = vpop.permute.xlu2 %971  ;;  %v858_v20 = vsel %vm357_vm3, %v1377_v38, 0.0 }
 0x468   :  { %v1925_v40 = vpop.eup %1380  ;;  %1305 = vmatmul.msk.f32.vlgmr.msra.gmra.mxu0 %vm357_vm3, %v1379_v39  ;;  %1114 = vmatpush.msrb.mxu2 %v1784_v36  ;;  %v861_v53 = vsel %vm357_vm3, %v1379_v39, 0.0 }
 0x469   :  { %1306 = vmatmul.msk.f32.vlgmr.msra.gmra.mxu3 %vm357_vm3, %v1925_v40  ;;  %1137 = vmatpush.msra.mxu0 %v1800_v56  ;;  %v864_v14 = vsel %vm357_vm3, %v1925_v40, 0.0 }
 0x46a   :  { %1160 = vmatpush.msra.mxu3 %v1828_v4  ;;  %1115 = vmatpush.msrb.mxu2 %v1782_v35 }
 0x46b   :  { %1138 = vmatpush.msra.mxu0 %v1802_v60  ;;  %1184 = vmatpush.msra.mxu1 %v1733_v25 }
 0x46c   :  { %1161 = vmatpush.msra.mxu3 %v1837_v5 }
 0x46e   :  { %1319 = vmatmul.msk.f32.vlgmr.msrb.gmra.mxu1 %vm243_vm2, %v972_v26 }
 0x46f   :  { %1310 = vmatmul.msk.f32.vlgmr.msra.gmra.mxu2 %vm243_vm2, %v972_v26 }
 0x470   :  { %1313 = vmatmul.msk.f32.vlgmr.msrb.gmra.mxu0 %vm243_vm2, %v972_v26 }
 0x471   :  { %1316 = vmatmul.msk.f32.vlgmr.msrb.gmra.mxu3 %vm243_vm2, %v972_v26 }
 0x497   :  { %v630_v34 = vpop.xlane.xlu2 %629 }
 0x4e3   :  { %v959_v56 = vpop.f32.mrf.mxu1 }
 0x4e5   :  { %v913_v36 = vpop.f32.mrf.mxu0 }
 0x4ea   :  { %v890_v4 = vpop.f32.mrf.mxu2 }
 0x4eb   :  { %v960_v41 = vadd.f32 %v959_v56, %v890_v4  ;;  %v1052_v47 = vpop.f32.mrf.mxu1 }
 0x4ec   :  { %v936_v35 = vpop.f32.mrf.mxu3  ;;  %v1064_v49 = vsel %vm357_vm3, %v1052_v47, -inf }
 0x4ed   :  { %v962_v42 = vadd.f32 %v960_v41, %v913_v36  ;;  %v1012_v60 = vpop.f32.mrf.mxu0 }
 0x4ee   :  { %v1058_v25 = vsel %vm357_vm3, %v1012_v60, -inf }
 0x4ef   :  { %v1942_v43 = vadd.f32 %v962_v42, %v936_v35  ;;  %1059 = vmax.xlane.f32.xlu1 %v1058_v25 }
 0x4f2   :  { %v992_v5 = vpop.f32.mrf.mxu2 }
 0x4f3   :  { %v1055_v44 = vsel %vm357_vm3, %v992_v5, -inf }
 0x4f4   :  { %v1032_v45 = vpop.f32.mrf.mxu3  ;;  %1056 = vmax.xlane.f32.xlu0 %v1055_v44 }
 0x4f5   :  { %v1061_v46 = vsel %vm357_vm3, %v1032_v45, -inf }
 0x4f7   :  { %1062 = vmax.xlane.f32.xlu1 %v1061_v46 }
 0x4fc   :  { %635 = vadd.xlane.f32.xlu0 %v634_v48 }
 0x4ff   :  { %1065 = vmax.xlane.f32.xlu1 %v1064_v49 }
 0x504   :  { %638 = vadd.xlane.f32.xlu0 %v637_v50 }
 0x507   :  { %632 = vadd.xlane.f32.xlu1 %v631_v51 }
 0x50f   :  { %856 = vadd.xlane.f32.xlu1 %v855_v55 }
 0x517   :  { %859 = vadd.xlane.f32.xlu1 %v858_v20 }
 0x51f   :  { %862 = vadd.xlane.f32.xlu1 %v861_v53 }
 0x562   :  { %v1060_v28 = vpop.xlane.xlu1 %1059 }
 0x567   :  { %v1057_v57 = vpop.xlane.xlu0 %1056 }
 0x568   :  { %v1067_v32 = vmax.f32 %v1057_v57, %v1060_v28  ;;  %v1204_v57 = vld [vmem:[#allocation11 + $0x18] sm:$0xff] }
 0x569   :  { %1224 = vmatpush.msra.mxu2 %v1204_v57 }
 0x56a   :  { %v1063_v58 = vpop.xlane.xlu1 %1062 }
 0x56b   :  { %v1068_v59 = vmax.f32 %v1067_v32, %v1063_v58  ;;  %v1203_v58 = vld [vmem:[#allocation11 + $0x10] sm:$0xff]  ;;  %v1202_v32 = vld [vmem:[#allocation11 + $0x8] sm:$0xff] }
 0x56c   :  { %1225 = vmatpush.msra.mxu2 %v1203_v58 }
 0x56e   :  { %1226 = vmatpush.msra.mxu2 %v1202_v32 }
 0x56f   :  { %v636_v18 = vpop.xlane.xlu0 %635 }
 0x572   :  { %v1066_v54 = vpop.xlane.xlu1 %1065 }
 0x573   :  { %v1069_v62 = vmax.f32 %v1068_v59, %v1066_v54  ;;  %v1201_v59 = vld [vmem:[#allocation11] sm:$0xff] }
 0x574   :  { %1227 = vmatpush.msra.mxu2 %v1201_v59 }
 0x575   :  { %v1070_v30 = vsub.f32 %v992_v5, %v1069_v62  ;;  %v1073_v29 = vsub.f32 %v1012_v60, %v1069_v62  ;;  %v1076_v52 = vsub.f32 %v1032_v45, %v1069_v62  ;;  %v1079_v15 = vsub.f32 %v1052_v47, %v1069_v62 }
 0x577   :  { %v1071_v2 = vmul.f32 1.442695, %v1070_v30  ;;  %v1074_v33 = vmul.f32 1.442695, %v1073_v29  ;;  %v1077_v31 = vmul.f32 1.442695, %v1076_v52  ;;  %v639_v61 = vpop.xlane.xlu0 %638 }
 0x578   :  { %v1080_v3 = vmul.f32 1.442695, %v1079_v15 }
 0x579   :  { %1382 = vpow2.f32 %v1071_v2 }
 0x57a   :  { %1384 = vpow2.f32 %v1074_v33  ;;  %v633_v23 = vpop.xlane.xlu1 %632 }
 0x57b   :  { %1386 = vpow2.f32 %v1077_v31  ;;  %v640_v22 = vadd.f32 %v633_v23, %v630_v34 }
 0x57c   :  { %1388 = vpow2.f32 %v1080_v3 }
 0x57d   :  { %v641_v38 = vadd.f32 %v640_v22, %v636_v18 }
 0x57f   :  { %v1383_v7 = vpop.eup %1382  ;;  %v642_v39 = vadd.f32 %v641_v38, %v639_v61 }
 0x580   :  { %v1385_v8 = vpop.eup %1384  ;;  %1323 = vmatmul.msk.f32.vlgmr.msra.gmra.mxu1 %vm357_vm3, %v1383_v7  ;;  %v1082_v9 = vsel %vm357_vm3, %v1383_v7, 0.0 }
 0x581   :  { %v1387_v10 = vpop.eup %1386  ;;  %1320 = vmatmul.msk.f32.vlgmr.msrb.gmra.mxu2 %vm357_vm3, %v1385_v8  ;;  %v1085_v11 = vsel %vm357_vm3, %v1385_v8, 0.0  ;;  %1083 = vadd.xlane.f32.xlu1 %v1082_v9  ;;  %1390 = vrcp.f32 %v642_v39 }
 0x582   :  { %v1389_v12 = vpop.eup %1388  ;;  %1321 = vmatmul.msk.f32.vlgmr.msra.gmra.mxu0 %vm357_vm3, %v1387_v10  ;;  %v1088_v13 = vsel %vm357_vm3, %v1387_v10, 0.0  ;;  %1086 = vadd.xlane.f32.xlu0 %v1085_v11  ;;  %v857_v63 = vpop.xlane.xlu1 %856 }
 0x583   :  { %1322 = vmatmul.msk.f32.vlgmr.msra.gmra.mxu3 %vm357_vm3, %v1389_v12  ;;  %1089 = vadd.xlane.f32.xlu2 %v1088_v13  ;;  %v1091_v16 = vsel %vm357_vm3, %v1389_v12, 0.0 }
 0x587   :  { %v1391_v40 = vpop.eup %1390 }
 0x588   :  { %v738_v26 = vmul.f32 %v1391_v40, %v1914_v1 }
 0x589   :  { %865 = vadd.xlane.f32.xlu1 %v864_v14 }
 0x58a   :  { %1092 = vadd.xlane.f32.xlu0 %v1091_v16  ;;  %v860_v36 = vpop.xlane.xlu1 %859 }
 0x58b   :  { %386 = vadd.xlane.f32.xlu2 %v385_v17  ;;  %v867_v41 = vadd.f32 %v860_v36, %v857_v63 }
 0x591   :  { %389 = vadd.xlane.f32.xlu1 %v388_v24 }
 0x592   :  { %392 = vadd.xlane.f32.xlu0 %v391_v27  ;;  %v863_v0 = vpop.xlane.xlu1 %862 }
 0x593   :  { %395 = vadd.xlane.f32.xlu2 %v394_v37  ;;  %v868_v6 = vadd.f32 %v867_v41, %v863_v0 }
 0x5aa   :  { %740 = vrot.lane.b32.xlu1 %v738_v26, %s1578_s18  ;;  %s1588_s18 = smov 24  }
 0x5f4   :  { %v1084_v56 = vpop.xlane.xlu1 %1083 }
 0x5f5   :  { %v1087_v4 = vpop.xlane.xlu0 %1086 }
 0x5f6   :  { %v1094_v35 = vadd.f32 %v1087_v4, %v1084_v56  ;;  %v1090_v60 = vpop.xlane.xlu2 %1089 }
 0x5f8   :  { %v1095_v44 = vadd.f32 %v1094_v35, %v1090_v60 }
 0x5fc   :  { %v866_v42 = vpop.xlane.xlu1 %865 }
 0x5fd   :  { %v869_v25 = vadd.f32 %v868_v6, %v866_v42  ;;  %v1093_v5 = vpop.xlane.xlu0 %1092  ;;  %v1186_v46 = vpop.f32.mrf.mxu1 }
 0x5fe   :  { %v1096_v45 = vadd.f32 %v1095_v44, %v1093_v5  ;;  %v387_v54 = vpop.xlane.xlu2 %386 }
 0x5ff   :  { %1392 = vrcp.f32 %v869_v25  ;;  %v1140_v49 = vpop.f32.mrf.mxu0 }
 0x600   :  { %1394 = vrcp.f32 %v1096_v45 }
 0x604   :  { %v1117_v1 = vpop.f32.mrf.mxu2  ;;  %v390_v62 = vpop.xlane.xlu1 %389 }
 0x605   :  { %v1393_v47 = vpop.eup %1392  ;;  %v1187_v48 = vadd.f32 %v1186_v46, %v1117_v1  ;;  %v393_v30 = vpop.xlane.xlu0 %392 }
 0x606   :  { %v965_v50 = vmul.f32 %v1393_v47, %v1942_v43  ;;  %v1163_v55 = vpop.f32.mrf.mxu3  ;;  %v1395_v53 = vpop.eup %1394  ;;  %v397_v43 = vadd.f32 %v390_v62, %v387_v54 }
 0x607   :  { %v1189_v51 = vadd.f32 %v1187_v48, %v1140_v49  ;;  %v396_v52 = vpop.xlane.xlu2 %395 }
 0x608   :  { %967 = vrot.lane.b32.xlu0 %v965_v50, %s1587_s7  ;;  %v398_v29 = vadd.f32 %v397_v43, %v393_v30 }
 0x609   :  { %v1190_v20 = vadd.f32 %v1189_v51, %v1163_v55 }
 0x60a   :  { %v399_v15 = vadd.f32 %v398_v29, %v396_v52 }
 0x60b   :  { %v1192_v28 = vmul.f32 %v1395_v53, %v1190_v20 }
 0x60c   :  { %1396 = vrcp.f32 %v399_v15 }
 0x60d   :  { %1194 = vrot.lane.b32.xlu2 %v1192_v28, %s1588_s18 }
 0x612   :  { %v1397_v2 = vpop.eup %1396 }
 0x613   :  { %v515_v31 = vmul.f32 %v1397_v2, %v1866_v19  ;;  %v1357_v19 = vld [vmem:[%s2002_s9] ss:$0 sm:$0xff] }
 0x615   :  { %v516_v8 = vadd.f32 %v515_v31, %v1719_v21 }
 0x61c   :  { %v741_v33 = vpop.permute.xlu1 %740 }
 0x61d   :  { %v743_v3 = vadd.f32 %v741_v33, %v1719_v21 }
 0x61f   :  { %v1198_v11 = vsel %vm243_vm2, %v516_v8, %v743_v3 }
 0x667   :  { %v1195_v7 = vpop.permute.xlu2 %1194 }
 0x668   :  { %v1197_v12 = vadd.f32 %v1195_v7, %v1719_v21 }
 0x67a   :  { %v968_v9 = vpop.permute.xlu0 %967 }
 0x67b   :  { %v970_v10 = vadd.f32 %v968_v9, %v1719_v21 }
 0x67d   :  { %v1199_v13 = vsel %vm357_vm3, %v1198_v11, %v970_v10 }
 0x67e   :  { %v1200_v14 = vsel %vm182_vm0, %v1199_v13, %v1197_v12 }
 0x67f   :  { %1324 = vmatmul.msk.f32.vlgmr.msra.gmra.mxu2 %vm151_vm1, %v1200_v14 }
 0x702   :  { %v1229_v16 = vpop.f32.mrf.mxu2 }
 0x703   :  { %v1230_v17 = vadd.f32 %v1357_v19, %v1229_v16 }
 0x705   :  { %v1232_v18 = vmax.f32 %v1230_v17, 0.0 }
 0x707   :  { %v1233_v21 = vadd.f32 %v1232_v18, %v1200_v14 }
 0x709   :  { %1234 = vst.msk [vmem:[#allocation13] sm:$0xff] %vm151_vm1, %v1233_v21 }
 0x70a   :  { %1245 = dma.vmem_to_hbm [thread:$0]  %s1241_s24, 128, %s1243_s27, [#allocation4]  }
 0x70b   :  { %1574 = dma.done.wait [#allocation4], 128  }
 0x70c   :  { %1575 = vsyncadd [#allocation4], 4294967168 }
 0x70d   :  { %1250 = vsyncpa [#allocation3], 1 }
 0x70e   :  { %1251 = vsyncpa [#allocation6], 1 }
 0x70f   :  { %1252 = vsyncpa [#allocation9], 1 }
 0x710   :  { %1253 = vsyncpa [#allocation12], 1 }
 0x711   :  { %1254 = vsyncpa [#allocation4], 1 }

</bundles_post_ra>
